<compile_context>
chip_gen: v7x
topology: tpu7x:2x2x1
jax: 0.10.0
libtpu: 0.0.40
codegen_flags: <defaults>
</compile_context>

<pallas_src>
import functools

import jax
import jax.numpy as jnp
from jax.experimental import pallas as pl
from jax.experimental.pallas import tpu as pltpu


# ----------------------------- Pallas kernels ------------------------------

def _gate_math(gates, c, H):
    """PyTorch gate order: (input, forget, cell, output)."""
    i_g = jax.nn.sigmoid(gates[:, 0 * H:1 * H])
    f_g = jax.nn.sigmoid(gates[:, 1 * H:2 * H])
    g_g = jnp.tanh(gates[:, 2 * H:3 * H])
    o_g = jax.nn.sigmoid(gates[:, 3 * H:4 * H])
    c_new = f_g * c + i_g * g_g
    h_new = o_g * jnp.tanh(c_new)
    return h_new, c_new


def _bilstm_fused_kernel(gxf_ref, gxb_ref, whhf_ref, whhb_ref, len_ref,
                         yf_ref, yb_ref, hf_ref, hb_ref, *, T, H):
    """One bidirectional LSTM layer, both directions fused in one time loop.

    gxf_ref/gxb_ref: (T, B, 4H)  precomputed x @ W_ih + b, actual-time order.
    whhf_ref/whhb_ref: (H, 4H)   recurrent weights (VMEM-resident for the loop).
    len_ref:  (B, 1) i32         valid lengths (packed-sequence semantics).
    yf_ref/yb_ref: (T, B, H)     per-step outputs in actual-time order
                                 (zeros at padding positions).
    hf_ref/hb_ref: (B, H)        final hidden state per direction.
    """
    whh_f = whhf_ref[...]                  # hoisted: loaded once for the loop
    whh_b = whhb_ref[...]
    lengths = len_ref[...]                 # (B, 1) int32, hoisted
    bw_start = T - lengths                 # hoisted backward mask bound (B, 1)
    B = len_ref.shape[0]
    zero = jnp.zeros((B, H), jnp.float32)

    def step(t, carry):
        hf, cf, hb, cb = carry                                     # (B, H) f32
        t_bw = T - 1 - t

        # Forward chain.
        gates_f = gxf_ref[t] + jnp.dot(hf, whh_f,
                                       preferred_element_type=jnp.float32)
        hf_new, cf_new = _gate_math(gates_f, cf, H)

        # Backward chain — independent of the forward one; the scheduler
        # interleaves the two MXU/EUP/VPU chains to hide serial latency.
        gates_b = gxb_ref[t_bw] + jnp.dot(hb, whh_b,
                                          preferred_element_type=jnp.float32)
        hb_new, cb_new = _gate_math(gates_b, cb, H)

        # Packed-sequence masking (bounds precomputed outside the loop):
        #   forward:  update while t      < length
        #   backward: update while t_bw   < length  <=>  t >= T - length
        mask_f = lengths > t                                       # (B, 1) bool
        mask_b = t >= bw_start                                     # (B, 1) bool
        hf = jnp.where(mask_f, hf_new, hf)
        cf = jnp.where(mask_f, cf_new, cf)
        hb = jnp.where(mask_b, hb_new, hb)
        cb = jnp.where(mask_b, cb_new, cb)
        yf_ref[t] = jnp.where(mask_f, hf_new, 0.0)
        yb_ref[t_bw] = jnp.where(mask_b, hb_new, 0.0)
        return hf, cf, hb, cb

    hf, _, hb, _ = jax.lax.fori_loop(0, T, step, (zero, zero, zero, zero),
                                     unroll=min(T, 8))
    hf_ref[...] = hf
    hb_ref[...] = hb


def _lstm_fwd_kernel(gx_ref, whh_ref, len_ref, y_ref, h_ref, *, T, H):
    """Unidirectional variant (same structure, single chain)."""
    whh = whh_ref[...]
    lengths = len_ref[...]
    B = len_ref.shape[0]
    zero = jnp.zeros((B, H), jnp.float32)

    def step(t, carry):
        h, c = carry
        gates = gx_ref[t] + jnp.dot(h, whh, preferred_element_type=jnp.float32)
        h_new, c_new = _gate_math(gates, c, H)
        mask = lengths > t
        h = jnp.where(mask, h_new, h)
        c = jnp.where(mask, c_new, c)
        y_ref[t] = jnp.where(mask, h_new, 0.0)
        return h, c

    h, _ = jax.lax.fori_loop(0, T, step, (zero, zero), unroll=min(T, 8))
    h_ref[...] = h


def lstm_layer(x_tbd, lengths_b1, w_ih, w_hh, bias):
    """One LSTM layer (all directions) over the full sequence.

    x_tbd:  (T, B, Din) f32 time-major activations
    w_ih:   (D, Din, 4H), w_hh: (D, H, 4H), bias: (D, 1, 4H)
    returns ys: tuple of (T, B, H) per direction (actual-time order),
            hs: tuple of (B, H) final hidden per direction.
    """
    T, B, _ = x_tbd.shape
    D, H = w_hh.shape[0], w_hh.shape[1]

    # Hoisted input projection: one big matmul over all T*B rows (MXU friendly),
    # outside the serial recurrence.  No time-flip for the backward direction.
    gx = jnp.einsum("tbi,dig->dtbg", x_tbd, w_ih,
                    preferred_element_type=jnp.float32) + bias[:, None]  # (D,T,B,4H)

    cost = pl.CostEstimate(
        flops=int(2 * D * T * B * H * 4 * H),
        transcendentals=int(5 * D * T * B * H),
        bytes_accessed=int(4 * (gx.size + w_hh.size + D * T * B * H + D * B * H
                                + lengths_b1.size)),
    )
    vmem = pl.BlockSpec(memory_space=pltpu.MemorySpace.VMEM)  # whole array, VMEM

    if D == 2:
        y_f, y_b, h_f, h_b = pl.pallas_call(
            functools.partial(_bilstm_fused_kernel, T=T, H=H),
            out_shape=(jax.ShapeDtypeStruct((T, B, H), jnp.float32),
                       jax.ShapeDtypeStruct((T, B, H), jnp.float32),
                       jax.ShapeDtypeStruct((B, H), jnp.float32),
                       jax.ShapeDtypeStruct((B, H), jnp.float32)),
            in_specs=[vmem] * 5,
            out_specs=[vmem] * 4,
            cost_estimate=cost,
        )(gx[0], gx[1], w_hh[0], w_hh[1], lengths_b1)
        return (y_f, y_b), (h_f, h_b)
    else:
        y_f, h_f = pl.pallas_call(
            functools.partial(_lstm_fwd_kernel, T=T, H=H),
            out_shape=(jax.ShapeDtypeStruct((T, B, H), jnp.float32),
                       jax.ShapeDtypeStruct((B, H), jnp.float32)),
            in_specs=[vmem] * 3,
            out_specs=[vmem] * 2,
            cost_estimate=cost,
        )(gx[0], w_hh[0], lengths_b1)
        return (y_f,), (h_f,)


# ------------------------------ model wrapper ------------------------------

def lstm_model_forward(params, ids, lengths):
    B_orig = ids.shape[0]
    # embedding lookup (glue; padding_idx row is zeroed at init time)
    x = jnp.take(params["embedding"], ids, axis=0)        # (B, T, E)
    x = jnp.transpose(x, (1, 0, 2)).astype(jnp.float32)   # (T, B, E) time-major
    lengths = lengths.astype(jnp.int32)

    # Pad batch to a multiple of 8 so (B,*) vregs are sublane-full; padded rows
    # get length 0, so the per-step mask keeps their state/outputs at zero.
    B_pad = ((B_orig + 7) // 8) * 8
    if B_pad != B_orig:
        x = jnp.pad(x, ((0, 0), (0, B_pad - B_orig), (0, 0)))
        lengths = jnp.pad(lengths, (0, B_pad - B_orig))
    lengths_b1 = lengths[:, None]                          # (B_pad, 1)

    bidir = params["bidirectional"]
    hs = None
    for lp in params["lstm"]:
        ys, hs = lstm_layer(x, lengths_b1, lp["w_ih"], lp["w_hh"], lp["b"])
        if bidir:
            # Both directions already in actual-time order (no flip needed).
            x = jnp.concatenate([ys[0], ys[1]], axis=-1)   # (T, B_pad, 2H)
        else:
            x = ys[0]
        # TODO(synk): inter-layer dropout treated as inference-mode identity.

    if bidir:
        # torch.cat([hidden[-1], hidden[-2]]) == [last-layer backward, forward]
        hidden = jnp.concatenate([hs[1], hs[0]], axis=-1)
    else:
        hidden = hs[0]
    hidden = hidden[:B_orig]                               # drop batch padding

    # Final FC is a tiny (B, 2H) @ (2H, O=5) matmul; plain XLA per perf review
    # (a dedicated pallas_call + HBM round-trip costs more than the compute).
    return hidden @ params["fc_w"] + params["fc_b"]


# ----------------------------- pure-JAX reference --------------------------

def _ref_lstm_dir(x, lengths, w_ih_t, w_hh_t, bias, reverse):
    T, B, _ = x.shape
    H = w_hh_t.shape[0]
    h = jnp.zeros((B, H), jnp.float32)
    c = jnp.zeros((B, H), jnp.float32)
    ys = [None] * T
    order = range(T - 1, -1, -1) if reverse else range(T)
    for tt in order:
        gates = x[tt] @ w_ih_t + h @ w_hh_t + bias
        i = jax.nn.sigmoid(gates[:, :H])
        f = jax.nn.sigmoid(gates[:, H:2 * H])
        g = jnp.tanh(gates[:, 2 * H:3 * H])
        o = jax.nn.sigmoid(gates[:, 3 * H:])
        c_new = f * c + i * g
        h_new = o * jnp.tanh(c_new)
        mask = (lengths > tt)[:, None]
        c = jnp.where(mask, c_new, c)
        h = jnp.where(mask, h_new, h)
        ys[tt] = jnp.where(mask, h_new, 0.0)
    return jnp.stack(ys, axis=0), h


def ref_model_forward(params, ids, lengths):
    x = jnp.take(params["embedding"], ids, axis=0)
    x = jnp.transpose(x, (1, 0, 2)).astype(jnp.float32)
    lengths = lengths.astype(jnp.int32)
    bidir = params["bidirectional"]
    h_f = h_b = None
    for lp in params["lstm"]:
        y_f, h_f = _ref_lstm_dir(x, lengths, lp["w_ih"][0], lp["w_hh"][0],
                                 lp["b"][0], False)
        if bidir:
            y_b, h_b = _ref_lstm_dir(x, lengths, lp["w_ih"][1], lp["w_hh"][1],
                                     lp["b"][1], True)
            x = jnp.concatenate([y_f, y_b], axis=-1)
        else:
            x = y_f
    hidden = jnp.concatenate([h_b, h_f], axis=-1) if bidir else h_f
    return hidden @ params["fc_w"] + params["fc_b"]


# --------------------------------- setup -----------------------------------

def init_params(key, vocab_size, embedding_dim, hidden_dim, output_dim,
                n_layers, bidirectional, pad_index):
    keys = jax.random.split(key, 64)
    ki = iter(range(64))
    k_bound = 1.0 / jnp.sqrt(hidden_dim).astype(jnp.float32)

    emb = jax.random.normal(keys[next(ki)], (vocab_size, embedding_dim), jnp.float32)
    emb = emb.at[pad_index].set(0.0)   # nn.Embedding zeroes the padding row

    def unif(k, shape, bound):
        return jax.random.uniform(k, shape, jnp.float32, -bound, bound)

    num_dirs = 2 if bidirectional else 1
    lstm_layers = []
    for layer in range(n_layers):
        in_dim = embedding_dim if layer == 0 else hidden_dim * num_dirs
        lp = {
            "w_ih": unif(keys[next(ki)], (num_dirs, in_dim, 4 * hidden_dim), k_bound),
            "w_hh": unif(keys[next(ki)], (num_dirs, hidden_dim, 4 * hidden_dim), k_bound),
            # PyTorch has b_ih + b_hh; model their sum.
            "b": (unif(keys[next(ki)], (num_dirs, 1, 4 * hidden_dim), k_bound)
                  + unif(keys[next(ki)], (num_dirs, 1, 4 * hidden_dim), k_bound)),
        }
        lstm_layers.append(lp)

    fc_in = hidden_dim * num_dirs
    fc_bound = 1.0 / jnp.sqrt(fc_in).astype(jnp.float32)
    params = {
        "embedding": emb,
        "lstm": lstm_layers,
        "fc_w": unif(keys[next(ki)], (fc_in, output_dim), fc_bound),
        "fc_b": unif(keys[next(ki)], (1, output_dim), fc_bound),
        "bidirectional": bidirectional,
    }
    return params


if __name__ == "__main__":
    vocab_size, embedding_dim, hidden_dim, output_dim = 50, 16, 32, 5
    n_layers, bidirectional, dropout_rate, pad_index = 2, True, 0.0, 0
    B, T = 4, 8

    key = jax.random.PRNGKey(0)
    k_param, k_ids = jax.random.split(key)
    params = init_params(k_param, vocab_size, embedding_dim, hidden_dim,
                         output_dim, n_layers, bidirectional, pad_index)

    lengths = jnp.array([8, 5, 7, 3], dtype=jnp.int32)
    ids = jax.random.randint(k_ids, (B, T), 1, vocab_size, dtype=jnp.int32)
    pos = jnp.arange(T)[None, :]
    ids = jnp.where(pos < lengths[:, None], ids, pad_index)   # pad past length

    pred = lstm_model_forward(params, ids, lengths)
    jax.block_until_ready(pred)

    pred_ref = ref_model_forward(params, ids, lengths)
    assert pred.shape == (B, output_dim)
    assert jnp.allclose(pred, pred_ref, atol=1e-4, rtol=1e-4), (
        f"mismatch:\n{pred}\nvs\n{pred_ref}")

    print("KERNEL_OK")
</pallas_src>

<mosaic_0001>
module attributes {stable_mosaic.version = 11 : i64} {
  func.func @_bilstm_fused_kernel(%arg0: memref<8x8x128xf32, #tpu.memory_space<vmem>>, %arg1: memref<8x8x128xf32, #tpu.memory_space<vmem>>, %arg2: memref<32x128xf32, #tpu.memory_space<vmem>>, %arg3: memref<32x128xf32, #tpu.memory_space<vmem>>, %arg4: memref<8x1xi32, #tpu.memory_space<vmem>>, %arg5: memref<8x8x32xf32, #tpu.memory_space<vmem>>, %arg6: memref<8x8x32xf32, #tpu.memory_space<vmem>>, %arg7: memref<8x32xf32, #tpu.memory_space<vmem>>, %arg8: memref<8x32xf32, #tpu.memory_space<vmem>>) attributes {dimension_semantics = [], scalar_prefetch = 0 : i64, scratch_operands = 0 : i64, tpu.core_type = #tpu.core_type<tc>} {
    %c0 = arith.constant 0 : index
    %c0_0 = arith.constant 0 : index
    %0 = vector.load %arg2[%c0, %c0_0] : memref<32x128xf32, #tpu.memory_space<vmem>>, vector<32x128xf32>
    %c0_1 = arith.constant 0 : index
    %c0_2 = arith.constant 0 : index
    %1 = vector.load %arg3[%c0_1, %c0_2] : memref<32x128xf32, #tpu.memory_space<vmem>>, vector<32x128xf32>
    %c0_3 = arith.constant 0 : index
    %c0_4 = arith.constant 0 : index
    %2 = vector.load %arg4[%c0_3, %c0_4] : memref<8x1xi32, #tpu.memory_space<vmem>>, vector<8x1xi32>
    %c8_i32 = arith.constant 8 : i32
    %3 = vector.broadcast %c8_i32 : i32 to vector<8x1xi32>
    %4 = arith.subi %3, %2 : vector<8x1xi32>
    %cst = arith.constant 0.000000e+00 : f32
    %5 = vector.broadcast %cst : f32 to vector<8x32xf32>
    %c0_i32 = arith.constant 0 : i32
    %c7_i32 = arith.constant 7 : i32
    %6 = arith.subi %c7_i32, %c0_i32 : i32
    %7 = arith.index_cast %c0_i32 : i32 to index
    %c0_5 = arith.constant 0 : index
    %c0_6 = arith.constant 0 : index
    %8 = vector.load %arg0[%7, %c0_5, %c0_6] : memref<8x8x128xf32, #tpu.memory_space<vmem>>, vector<1x8x128xf32>
    %9 = vector.shape_cast %8 : vector<1x8x128xf32> to vector<8x128xf32>
    %cst_7 = arith.constant dense<0.000000e+00> : vector<8x128xf32>
    %10 = tpu.matmul %5, %0, %cst_7 {dimension_numbers = #tpu.dot_dimension_numbers<[1], [0], [0], [1], [0, 0, 1, 1], [], []>} : vector<8x32xf32>, vector<32x128xf32>, vector<8x128xf32> -> vector<8x128xf32>
    %11 = arith.addf %9, %10 : vector<8x128xf32>
    %12 = vector.extract_strided_slice %11 {offsets = [0, 0], sizes = [8, 32], strides = [1, 1]} : vector<8x128xf32> to vector<8x32xf32>
    %13 = arith.negf %12 : vector<8x32xf32>
    %14 = math.exp %13 : vector<8x32xf32>
    %cst_8 = arith.constant 1.000000e+00 : f32
    %15 = vector.broadcast %cst_8 : f32 to vector<8x32xf32>
    %16 = arith.addf %15, %14 : vector<8x32xf32>
    %17 = arith.divf %15, %16 : vector<8x32xf32>
    %18 = vector.extract_strided_slice %11 {offsets = [0, 32], sizes = [8, 32], strides = [1, 1]} : vector<8x128xf32> to vector<8x32xf32>
    %19 = arith.negf %18 : vector<8x32xf32>
    %20 = math.exp %19 : vector<8x32xf32>
    %cst_9 = arith.constant 1.000000e+00 : f32
    %21 = vector.broadcast %cst_9 : f32 to vector<8x32xf32>
    %22 = arith.addf %21, %20 : vector<8x32xf32>
    %23 = arith.divf %21, %22 : vector<8x32xf32>
    %24 = vector.extract_strided_slice %11 {offsets = [0, 64], sizes = [8, 32], strides = [1, 1]} : vector<8x128xf32> to vector<8x32xf32>
    %25 = math.tanh %24 : vector<8x32xf32>
    %26 = vector.extract_strided_slice %11 {offsets = [0, 96], sizes = [8, 32], strides = [1, 1]} : vector<8x128xf32> to vector<8x32xf32>
    %27 = arith.negf %26 : vector<8x32xf32>
    %28 = math.exp %27 : vector<8x32xf32>
    %cst_10 = arith.constant 1.000000e+00 : f32
    %29 = vector.broadcast %cst_10 : f32 to vector<8x32xf32>
    %30 = arith.addf %29, %28 : vector<8x32xf32>
    %31 = arith.divf %29, %30 : vector<8x32xf32>
    %32 = arith.mulf %23, %5 : vector<8x32xf32>
    %33 = arith.mulf %17, %25 : vector<8x32xf32>
    %34 = arith.addf %32, %33 : vector<8x32xf32>
    %35 = math.tanh %34 : vector<8x32xf32>
    %36 = arith.mulf %31, %35 : vector<8x32xf32>
    %37 = arith.index_cast %6 : i32 to index
    %c0_11 = arith.constant 0 : index
    %c0_12 = arith.constant 0 : index
    %38 = vector.load %arg1[%37, %c0_11, %c0_12] : memref<8x8x128xf32, #tpu.memory_space<vmem>>, vector<1x8x128xf32>
    %39 = vector.shape_cast %38 : vector<1x8x128xf32> to vector<8x128xf32>
    %cst_13 = arith.constant dense<0.000000e+00> : vector<8x128xf32>
    %40 = tpu.matmul %5, %1, %cst_13 {dimension_numbers = #tpu.dot_dimension_numbers<[1], [0], [0], [1], [0, 0, 1, 1], [], []>} : vector<8x32xf32>, vector<32x128xf32>, vector<8x128xf32> -> vector<8x128xf32>
    %41 = arith.addf %39, %40 : vector<8x128xf32>
    %42 = vector.extract_strided_slice %41 {offsets = [0, 0], sizes = [8, 32], strides = [1, 1]} : vector<8x128xf32> to vector<8x32xf32>
    %43 = arith.negf %42 : vector<8x32xf32>
    %44 = math.exp %43 : vector<8x32xf32>
    %cst_14 = arith.constant 1.000000e+00 : f32
    %45 = vector.broadcast %cst_14 : f32 to vector<8x32xf32>
    %46 = arith.addf %45, %44 : vector<8x32xf32>
    %47 = arith.divf %45, %46 : vector<8x32xf32>
    %48 = vector.extract_strided_slice %41 {offsets = [0, 32], sizes = [8, 32], strides = [1, 1]} : vector<8x128xf32> to vector<8x32xf32>
    %49 = arith.negf %48 : vector<8x32xf32>
    %50 = math.exp %49 : vector<8x32xf32>
    %cst_15 = arith.constant 1.000000e+00 : f32
    %51 = vector.broadcast %cst_15 : f32 to vector<8x32xf32>
    %52 = arith.addf %51, %50 : vector<8x32xf32>
    %53 = arith.divf %51, %52 : vector<8x32xf32>
    %54 = vector.extract_strided_slice %41 {offsets = [0, 64], sizes = [8, 32], strides = [1, 1]} : vector<8x128xf32> to vector<8x32xf32>
    %55 = math.tanh %54 : vector<8x32xf32>
    %56 = vector.extract_strided_slice %41 {offsets = [0, 96], sizes = [8, 32], strides = [1, 1]} : vector<8x128xf32> to vector<8x32xf32>
    %57 = arith.negf %56 : vector<8x32xf32>
    %58 = math.exp %57 : vector<8x32xf32>
    %cst_16 = arith.constant 1.000000e+00 : f32
    %59 = vector.broadcast %cst_16 : f32 to vector<8x32xf32>
    %60 = arith.addf %59, %58 : vector<8x32xf32>
    %61 = arith.divf %59, %60 : vector<8x32xf32>
    %62 = arith.mulf %53, %5 : vector<8x32xf32>
    %63 = arith.mulf %47, %55 : vector<8x32xf32>
    %64 = arith.addf %62, %63 : vector<8x32xf32>
    %65 = math.tanh %64 : vector<8x32xf32>
    %66 = arith.mulf %61, %65 : vector<8x32xf32>
    %67 = vector.broadcast %c0_i32 : i32 to vector<8x1xi32>
    %68 = arith.cmpi sgt, %2, %67 : vector<8x1xi32>
    %69 = vector.broadcast %c0_i32 : i32 to vector<8x1xi32>
    %70 = arith.cmpi sge, %69, %4 : vector<8x1xi32>
    %71 = vector.shape_cast %68 : vector<8x1xi1> to vector<8x1xi1>
    %72 = vector.broadcast %71 : vector<8x1xi1> to vector<8x32xi1>
    %73 = arith.select %72, %36, %5 : vector<8x32xi1>, vector<8x32xf32>
    %74 = vector.shape_cast %68 : vector<8x1xi1> to vector<8x1xi1>
    %75 = vector.broadcast %74 : vector<8x1xi1> to vector<8x32xi1>
    %76 = arith.select %75, %34, %5 : vector<8x32xi1>, vector<8x32xf32>
    %77 = vector.shape_cast %70 : vector<8x1xi1> to vector<8x1xi1>
    %78 = vector.broadcast %77 : vector<8x1xi1> to vector<8x32xi1>
    %79 = arith.select %78, %66, %5 : vector<8x32xi1>, vector<8x32xf32>
    %80 = vector.shape_cast %70 : vector<8x1xi1> to vector<8x1xi1>
    %81 = vector.broadcast %80 : vector<8x1xi1> to vector<8x32xi1>
    %82 = arith.select %81, %64, %5 : vector<8x32xi1>, vector<8x32xf32>
    %cst_17 = arith.constant 0.000000e+00 : f32
    %83 = vector.shape_cast %68 : vector<8x1xi1> to vector<8x1xi1>
    %84 = vector.broadcast %83 : vector<8x1xi1> to vector<8x32xi1>
    %85 = vector.broadcast %cst_17 : f32 to vector<8x32xf32>
    %86 = arith.select %84, %36, %85 : vector<8x32xi1>, vector<8x32xf32>
    %87 = arith.index_cast %c0_i32 : i32 to index
    %c0_18 = arith.constant 0 : index
    %c0_19 = arith.constant 0 : index
    %88 = vector.load %arg5[%87, %c0_18, %c0_19] : memref<8x8x32xf32, #tpu.memory_space<vmem>>, vector<1x8x32xf32>
    %89 = vector.shape_cast %88 : vector<1x8x32xf32> to vector<8x32xf32>
    %90 = vector.shape_cast %86 : vector<8x32xf32> to vector<1x8x32xf32>
    tpu.vector_store %arg5[%87, %c0_18, %c0_19], %90 {strides = array<i32>} : memref<8x8x32xf32, #tpu.memory_space<vmem>>, vector<1x8x32xf32>,
    %cst_20 = arith.constant 0.000000e+00 : f32
    %91 = vector.shape_cast %70 : vector<8x1xi1> to vector<8x1xi1>
    %92 = vector.broadcast %91 : vector<8x1xi1> to vector<8x32xi1>
    %93 = vector.broadcast %cst_20 : f32 to vector<8x32xf32>
    %94 = arith.select %92, %66, %93 : vector<8x32xi1>, vector<8x32xf32>
    %95 = arith.index_cast %6 : i32 to index
    %c0_21 = arith.constant 0 : index
    %c0_22 = arith.constant 0 : index
    %96 = vector.load %arg6[%95, %c0_21, %c0_22] : memref<8x8x32xf32, #tpu.memory_space<vmem>>, vector<1x8x32xf32>
    %97 = vector.shape_cast %96 : vector<1x8x32xf32> to vector<8x32xf32>
    %98 = vector.shape_cast %94 : vector<8x32xf32> to vector<1x8x32xf32>
    tpu.vector_store %arg6[%95, %c0_21, %c0_22], %98 {strides = array<i32>} : memref<8x8x32xf32, #tpu.memory_space<vmem>>, vector<1x8x32xf32>,
    %c1_i32 = arith.constant 1 : i32
    %c7_i32_23 = arith.constant 7 : i32
    %99 = arith.subi %c7_i32_23, %c1_i32 : i32
    %100 = arith.index_cast %c1_i32 : i32 to index
    %c0_24 = arith.constant 0 : index
    %c0_25 = arith.constant 0 : index
    %101 = vector.load %arg0[%100, %c0_24, %c0_25] : memref<8x8x128xf32, #tpu.memory_space<vmem>>, vector<1x8x128xf32>
    %102 = vector.shape_cast %101 : vector<1x8x128xf32> to vector<8x128xf32>
    %cst_26 = arith.constant dense<0.000000e+00> : vector<8x128xf32>
    %103 = tpu.matmul %73, %0, %cst_26 {dimension_numbers = #tpu.dot_dimension_numbers<[1], [0], [0], [1], [0, 0, 1, 1], [], []>} : vector<8x32xf32>, vector<32x128xf32>, vector<8x128xf32> -> vector<8x128xf32>
    %104 = arith.addf %102, %103 : vector<8x128xf32>
    %105 = vector.extract_strided_slice %104 {offsets = [0, 0], sizes = [8, 32], strides = [1, 1]} : vector<8x128xf32> to vector<8x32xf32>
    %106 = arith.negf %105 : vector<8x32xf32>
    %107 = math.exp %106 : vector<8x32xf32>
    %cst_27 = arith.constant 1.000000e+00 : f32
    %108 = vector.broadcast %cst_27 : f32 to vector<8x32xf32>
    %109 = arith.addf %108, %107 : vector<8x32xf32>
    %110 = arith.divf %108, %109 : vector<8x32xf32>
    %111 = vector.extract_strided_slice %104 {offsets = [0, 32], sizes = [8, 32], strides = [1, 1]} : vector<8x128xf32> to vector<8x32xf32>
    %112 = arith.negf %111 : vector<8x32xf32>
    %113 = math.exp %112 : vector<8x32xf32>
    %cst_28 = arith.constant 1.000000e+00 : f32
    %114 = vector.broadcast %cst_28 : f32 to vector<8x32xf32>
    %115 = arith.addf %114, %113 : vector<8x32xf32>
    %116 = arith.divf %114, %115 : vector<8x32xf32>
    %117 = vector.extract_strided_slice %104 {offsets = [0, 64], sizes = [8, 32], strides = [1, 1]} : vector<8x128xf32> to vector<8x32xf32>
    %118 = math.tanh %117 : vector<8x32xf32>
    %119 = vector.extract_strided_slice %104 {offsets = [0, 96], sizes = [8, 32], strides = [1, 1]} : vector<8x128xf32> to vector<8x32xf32>
    %120 = arith.negf %119 : vector<8x32xf32>
    %121 = math.exp %120 : vector<8x32xf32>
    %cst_29 = arith.constant 1.000000e+00 : f32
    %122 = vector.broadcast %cst_29 : f32 to vector<8x32xf32>
    %123 = arith.addf %122, %121 : vector<8x32xf32>
    %124 = arith.divf %122, %123 : vector<8x32xf32>
    %125 = arith.mulf %116, %76 : vector<8x32xf32>
    %126 = arith.mulf %110, %118 : vector<8x32xf32>
    %127 = arith.addf %125, %126 : vector<8x32xf32>
    %128 = math.tanh %127 : vector<8x32xf32>
    %129 = arith.mulf %124, %128 : vector<8x32xf32>
    %130 = arith.index_cast %99 : i32 to index
    %c0_30 = arith.constant 0 : index
    %c0_31 = arith.constant 0 : index
    %131 = vector.load %arg1[%130, %c0_30, %c0_31] : memref<8x8x128xf32, #tpu.memory_space<vmem>>, vector<1x8x128xf32>
    %132 = vector.shape_cast %131 : vector<1x8x128xf32> to vector<8x128xf32>
    %cst_32 = arith.constant dense<0.000000e+00> : vector<8x128xf32>
    %133 = tpu.matmul %79, %1, %cst_32 {dimension_numbers = #tpu.dot_dimension_numbers<[1], [0], [0], [1], [0, 0, 1, 1], [], []>} : vector<8x32xf32>, vector<32x128xf32>, vector<8x128xf32> -> vector<8x128xf32>
    %134 = arith.addf %132, %133 : vector<8x128xf32>
    %135 = vector.extract_strided_slice %134 {offsets = [0, 0], sizes = [8, 32], strides = [1, 1]} : vector<8x128xf32> to vector<8x32xf32>
    %136 = arith.negf %135 : vector<8x32xf32>
    %137 = math.exp %136 : vector<8x32xf32>
    %cst_33 = arith.constant 1.000000e+00 : f32
    %138 = vector.broadcast %cst_33 : f32 to vector<8x32xf32>
    %139 = arith.addf %138, %137 : vector<8x32xf32>
    %140 = arith.divf %138, %139 : vector<8x32xf32>
    %141 = vector.extract_strided_slice %134 {offsets = [0, 32], sizes = [8, 32], strides = [1, 1]} : vector<8x128xf32> to vector<8x32xf32>
    %142 = arith.negf %141 : vector<8x32xf32>
    %143 = math.exp %142 : vector<8x32xf32>
    %cst_34 = arith.constant 1.000000e+00 : f32
    %144 = vector.broadcast %cst_34 : f32 to vector<8x32xf32>
    %145 = arith.addf %144, %143 : vector<8x32xf32>
    %146 = arith.divf %144, %145 : vector<8x32xf32>
    %147 = vector.extract_strided_slice %134 {offsets = [0, 64], sizes = [8, 32], strides = [1, 1]} : vector<8x128xf32> to vector<8x32xf32>
    %148 = math.tanh %147 : vector<8x32xf32>
    %149 = vector.extract_strided_slice %134 {offsets = [0, 96], sizes = [8, 32], strides = [1, 1]} : vector<8x128xf32> to vector<8x32xf32>
    %150 = arith.negf %149 : vector<8x32xf32>
    %151 = math.exp %150 : vector<8x32xf32>
    %cst_35 = arith.constant 1.000000e+00 : f32
    %152 = vector.broadcast %cst_35 : f32 to vector<8x32xf32>
    %153 = arith.addf %152, %151 : vector<8x32xf32>
    %154 = arith.divf %152, %153 : vector<8x32xf32>
    %155 = arith.mulf %146, %82 : vector<8x32xf32>
    %156 = arith.mulf %140, %148 : vector<8x32xf32>
    %157 = arith.addf %155, %156 : vector<8x32xf32>
    %158 = math.tanh %157 : vector<8x32xf32>
    %159 = arith.mulf %154, %158 : vector<8x32xf32>
    %160 = vector.broadcast %c1_i32 : i32 to vector<8x1xi32>
    %161 = arith.cmpi sgt, %2, %160 : vector<8x1xi32>
    %162 = vector.broadcast %c1_i32 : i32 to vector<8x1xi32>
    %163 = arith.cmpi sge, %162, %4 : vector<8x1xi32>
    %164 = vector.shape_cast %161 : vector<8x1xi1> to vector<8x1xi1>
    %165 = vector.broadcast %164 : vector<8x1xi1> to vector<8x32xi1>
    %166 = arith.select %165, %129, %73 : vector<8x32xi1>, vector<8x32xf32>
    %167 = vector.shape_cast %161 : vector<8x1xi1> to vector<8x1xi1>
    %168 = vector.broadcast %167 : vector<8x1xi1> to vector<8x32xi1>
    %169 = arith.select %168, %127, %76 : vector<8x32xi1>, vector<8x32xf32>
    %170 = vector.shape_cast %163 : vector<8x1xi1> to vector<8x1xi1>
    %171 = vector.broadcast %170 : vector<8x1xi1> to vector<8x32xi1>
    %172 = arith.select %171, %159, %79 : vector<8x32xi1>, vector<8x32xf32>
    %173 = vector.shape_cast %163 : vector<8x1xi1> to vector<8x1xi1>
    %174 = vector.broadcast %173 : vector<8x1xi1> to vector<8x32xi1>
    %175 = arith.select %174, %157, %82 : vector<8x32xi1>, vector<8x32xf32>
    %cst_36 = arith.constant 0.000000e+00 : f32
    %176 = vector.shape_cast %161 : vector<8x1xi1> to vector<8x1xi1>
    %177 = vector.broadcast %176 : vector<8x1xi1> to vector<8x32xi1>
    %178 = vector.broadcast %cst_36 : f32 to vector<8x32xf32>
    %179 = arith.select %177, %129, %178 : vector<8x32xi1>, vector<8x32xf32>
    %180 = arith.index_cast %c1_i32 : i32 to index
    %c0_37 = arith.constant 0 : index
    %c0_38 = arith.constant 0 : index
    %181 = vector.load %arg5[%180, %c0_37, %c0_38] : memref<8x8x32xf32, #tpu.memory_space<vmem>>, vector<1x8x32xf32>
    %182 = vector.shape_cast %181 : vector<1x8x32xf32> to vector<8x32xf32>
    %183 = vector.shape_cast %179 : vector<8x32xf32> to vector<1x8x32xf32>
    tpu.vector_store %arg5[%180, %c0_37, %c0_38], %183 {strides = array<i32>} : memref<8x8x32xf32, #tpu.memory_space<vmem>>, vector<1x8x32xf32>,
    %cst_39 = arith.constant 0.000000e+00 : f32
    %184 = vector.shape_cast %163 : vector<8x1xi1> to vector<8x1xi1>
    %185 = vector.broadcast %184 : vector<8x1xi1> to vector<8x32xi1>
    %186 = vector.broadcast %cst_39 : f32 to vector<8x32xf32>
    %187 = arith.select %185, %159, %186 : vector<8x32xi1>, vector<8x32xf32>
    %188 = arith.index_cast %99 : i32 to index
    %c0_40 = arith.constant 0 : index
    %c0_41 = arith.constant 0 : index
    %189 = vector.load %arg6[%188, %c0_40, %c0_41] : memref<8x8x32xf32, #tpu.memory_space<vmem>>, vector<1x8x32xf32>
    %190 = vector.shape_cast %189 : vector<1x8x32xf32> to vector<8x32xf32>
    %191 = vector.shape_cast %187 : vector<8x32xf32> to vector<1x8x32xf32>
    tpu.vector_store %arg6[%188, %c0_40, %c0_41], %191 {strides = array<i32>} : memref<8x8x32xf32, #tpu.memory_space<vmem>>, vector<1x8x32xf32>,
    %c2_i32 = arith.constant 2 : i32
    %c7_i32_42 = arith.constant 7 : i32
    %192 = arith.subi %c7_i32_42, %c2_i32 : i32
    %193 = arith.index_cast %c2_i32 : i32 to index
    %c0_43 = arith.constant 0 : index
    %c0_44 = arith.constant 0 : index
    %194 = vector.load %arg0[%193, %c0_43, %c0_44] : memref<8x8x128xf32, #tpu.memory_space<vmem>>, vector<1x8x128xf32>
    %195 = vector.shape_cast %194 : vector<1x8x128xf32> to vector<8x128xf32>
    %cst_45 = arith.constant dense<0.000000e+00> : vector<8x128xf32>
    %196 = tpu.matmul %166, %0, %cst_45 {dimension_numbers = #tpu.dot_dimension_numbers<[1], [0], [0], [1], [0, 0, 1, 1], [], []>} : vector<8x32xf32>, vector<32x128xf32>, vector<8x128xf32> -> vector<8x128xf32>
    %197 = arith.addf %195, %196 : vector<8x128xf32>
    %198 = vector.extract_strided_slice %197 {offsets = [0, 0], sizes = [8, 32], strides = [1, 1]} : vector<8x128xf32> to vector<8x32xf32>
    %199 = arith.negf %198 : vector<8x32xf32>
    %200 = math.exp %199 : vector<8x32xf32>
    %cst_46 = arith.constant 1.000000e+00 : f32
    %201 = vector.broadcast %cst_46 : f32 to vector<8x32xf32>
    %202 = arith.addf %201, %200 : vector<8x32xf32>
    %203 = arith.divf %201, %202 : vector<8x32xf32>
    %204 = vector.extract_strided_slice %197 {offsets = [0, 32], sizes = [8, 32], strides = [1, 1]} : vector<8x128xf32> to vector<8x32xf32>
    %205 = arith.negf %204 : vector<8x32xf32>
    %206 = math.exp %205 : vector<8x32xf32>
    %cst_47 = arith.constant 1.000000e+00 : f32
    %207 = vector.broadcast %cst_47 : f32 to vector<8x32xf32>
    %208 = arith.addf %207, %206 : vector<8x32xf32>
    %209 = arith.divf %207, %208 : vector<8x32xf32>
    %210 = vector.extract_strided_slice %197 {offsets = [0, 64], sizes = [8, 32], strides = [1, 1]} : vector<8x128xf32> to vector<8x32xf32>
    %211 = math.tanh %210 : vector<8x32xf32>
    %212 = vector.extract_strided_slice %197 {offsets = [0, 96], sizes = [8, 32], strides = [1, 1]} : vector<8x128xf32> to vector<8x32xf32>
    %213 = arith.negf %212 : vector<8x32xf32>
    %214 = math.exp %213 : vector<8x32xf32>
    %cst_48 = arith.constant 1.000000e+00 : f32
    %215 = vector.broadcast %cst_48 : f32 to vector<8x32xf32>
    %216 = arith.addf %215, %214 : vector<8x32xf32>
    %217 = arith.divf %215, %216 : vector<8x32xf32>
    %218 = arith.mulf %209, %169 : vector<8x32xf32>
    %219 = arith.mulf %203, %211 : vector<8x32xf32>
    %220 = arith.addf %218, %219 : vector<8x32xf32>
    %221 = math.tanh %220 : vector<8x32xf32>
    %222 = arith.mulf %217, %221 : vector<8x32xf32>
    %223 = arith.index_cast %192 : i32 to index
    %c0_49 = arith.constant 0 : index
    %c0_50 = arith.constant 0 : index
    %224 = vector.load %arg1[%223, %c0_49, %c0_50] : memref<8x8x128xf32, #tpu.memory_space<vmem>>, vector<1x8x128xf32>
    %225 = vector.shape_cast %224 : vector<1x8x128xf32> to vector<8x128xf32>
    %cst_51 = arith.constant dense<0.000000e+00> : vector<8x128xf32>
    %226 = tpu.matmul %172, %1, %cst_51 {dimension_numbers = #tpu.dot_dimension_numbers<[1], [0], [0], [1], [0, 0, 1, 1], [], []>} : vector<8x32xf32>, vector<32x128xf32>, vector<8x128xf32> -> vector<8x128xf32>
    %227 = arith.addf %225, %226 : vector<8x128xf32>
    %228 = vector.extract_strided_slice %227 {offsets = [0, 0], sizes = [8, 32], strides = [1, 1]} : vector<8x128xf32> to vector<8x32xf32>
    %229 = arith.negf %228 : vector<8x32xf32>
    %230 = math.exp %229 : vector<8x32xf32>
    %cst_52 = arith.constant 1.000000e+00 : f32
    %231 = vector.broadcast %cst_52 : f32 to vector<8x32xf32>
    %232 = arith.addf %231, %230 : vector<8x32xf32>
    %233 = arith.divf %231, %232 : vector<8x32xf32>
    %234 = vector.extract_strided_slice %227 {offsets = [0, 32], sizes = [8, 32], strides = [1, 1]} : vector<8x128xf32> to vector<8x32xf32>
    %235 = arith.negf %234 : vector<8x32xf32>
    %236 = math.exp %235 : vector<8x32xf32>
    %cst_53 = arith.constant 1.000000e+00 : f32
    %237 = vector.broadcast %cst_53 : f32 to vector<8x32xf32>
    %238 = arith.addf %237, %236 : vector<8x32xf32>
    %239 = arith.divf %237, %238 : vector<8x32xf32>
    %240 = vector.extract_strided_slice %227 {offsets = [0, 64], sizes = [8, 32], strides = [1, 1]} : vector<8x128xf32> to vector<8x32xf32>
    %241 = math.tanh %240 : vector<8x32xf32>
    %242 = vector.extract_strided_slice %227 {offsets = [0, 96], sizes = [8, 32], strides = [1, 1]} : vector<8x128xf32> to vector<8x32xf32>
    %243 = arith.negf %242 : vector<8x32xf32>
    %244 = math.exp %243 : vector<8x32xf32>
    %cst_54 = arith.constant 1.000000e+00 : f32
    %245 = vector.broadcast %cst_54 : f32 to vector<8x32xf32>
    %246 = arith.addf %245, %244 : vector<8x32xf32>
    %247 = arith.divf %245, %246 : vector<8x32xf32>
    %248 = arith.mulf %239, %175 : vector<8x32xf32>
    %249 = arith.mulf %233, %241 : vector<8x32xf32>
    %250 = arith.addf %248, %249 : vector<8x32xf32>
    %251 = math.tanh %250 : vector<8x32xf32>
    %252 = arith.mulf %247, %251 : vector<8x32xf32>
    %253 = vector.broadcast %c2_i32 : i32 to vector<8x1xi32>
    %254 = arith.cmpi sgt, %2, %253 : vector<8x1xi32>
    %255 = vector.broadcast %c2_i32 : i32 to vector<8x1xi32>
    %256 = arith.cmpi sge, %255, %4 : vector<8x1xi32>
    %257 = vector.shape_cast %254 : vector<8x1xi1> to vector<8x1xi1>
    %258 = vector.broadcast %257 : vector<8x1xi1> to vector<8x32xi1>
    %259 = arith.select %258, %222, %166 : vector<8x32xi1>, vector<8x32xf32>
    %260 = vector.shape_cast %254 : vector<8x1xi1> to vector<8x1xi1>
    %261 = vector.broadcast %260 : vector<8x1xi1> to vector<8x32xi1>
    %262 = arith.select %261, %220, %169 : vector<8x32xi1>, vector<8x32xf32>
    %263 = vector.shape_cast %256 : vector<8x1xi1> to vector<8x1xi1>
    %264 = vector.broadcast %263 : vector<8x1xi1> to vector<8x32xi1>
    %265 = arith.select %264, %252, %172 : vector<8x32xi1>, vector<8x32xf32>
    %266 = vector.shape_cast %256 : vector<8x1xi1> to vector<8x1xi1>
    %267 = vector.broadcast %266 : vector<8x1xi1> to vector<8x32xi1>
    %268 = arith.select %267, %250, %175 : vector<8x32xi1>, vector<8x32xf32>
    %cst_55 = arith.constant 0.000000e+00 : f32
    %269 = vector.shape_cast %254 : vector<8x1xi1> to vector<8x1xi1>
    %270 = vector.broadcast %269 : vector<8x1xi1> to vector<8x32xi1>
    %271 = vector.broadcast %cst_55 : f32 to vector<8x32xf32>
    %272 = arith.select %270, %222, %271 : vector<8x32xi1>, vector<8x32xf32>
    %273 = arith.index_cast %c2_i32 : i32 to index
    %c0_56 = arith.constant 0 : index
    %c0_57 = arith.constant 0 : index
    %274 = vector.load %arg5[%273, %c0_56, %c0_57] : memref<8x8x32xf32, #tpu.memory_space<vmem>>, vector<1x8x32xf32>
    %275 = vector.shape_cast %274 : vector<1x8x32xf32> to vector<8x32xf32>
    %276 = vector.shape_cast %272 : vector<8x32xf32> to vector<1x8x32xf32>
    tpu.vector_store %arg5[%273, %c0_56, %c0_57], %276 {strides = array<i32>} : memref<8x8x32xf32, #tpu.memory_space<vmem>>, vector<1x8x32xf32>,
    %cst_58 = arith.constant 0.000000e+00 : f32
    %277 = vector.shape_cast %256 : vector<8x1xi1> to vector<8x1xi1>
    %278 = vector.broadcast %277 : vector<8x1xi1> to vector<8x32xi1>
    %279 = vector.broadcast %cst_58 : f32 to vector<8x32xf32>
    %280 = arith.select %278, %252, %279 : vector<8x32xi1>, vector<8x32xf32>
    %281 = arith.index_cast %192 : i32 to index
    %c0_59 = arith.constant 0 : index
    %c0_60 = arith.constant 0 : index
    %282 = vector.load %arg6[%281, %c0_59, %c0_60] : memref<8x8x32xf32, #tpu.memory_space<vmem>>, vector<1x8x32xf32>
    %283 = vector.shape_cast %282 : vector<1x8x32xf32> to vector<8x32xf32>
    %284 = vector.shape_cast %280 : vector<8x32xf32> to vector<1x8x32xf32>
    tpu.vector_store %arg6[%281, %c0_59, %c0_60], %284 {strides = array<i32>} : memref<8x8x32xf32, #tpu.memory_space<vmem>>, vector<1x8x32xf32>,
    %c3_i32 = arith.constant 3 : i32
    %c7_i32_61 = arith.constant 7 : i32
    %285 = arith.subi %c7_i32_61, %c3_i32 : i32
    %286 = arith.index_cast %c3_i32 : i32 to index
    %c0_62 = arith.constant 0 : index
    %c0_63 = arith.constant 0 : index
    %287 = vector.load %arg0[%286, %c0_62, %c0_63] : memref<8x8x128xf32, #tpu.memory_space<vmem>>, vector<1x8x128xf32>
    %288 = vector.shape_cast %287 : vector<1x8x128xf32> to vector<8x128xf32>
    %cst_64 = arith.constant dense<0.000000e+00> : vector<8x128xf32>
    %289 = tpu.matmul %259, %0, %cst_64 {dimension_numbers = #tpu.dot_dimension_numbers<[1], [0], [0], [1], [0, 0, 1, 1], [], []>} : vector<8x32xf32>, vector<32x128xf32>, vector<8x128xf32> -> vector<8x128xf32>
    %290 = arith.addf %288, %289 : vector<8x128xf32>
    %291 = vector.extract_strided_slice %290 {offsets = [0, 0], sizes = [8, 32], strides = [1, 1]} : vector<8x128xf32> to vector<8x32xf32>
    %292 = arith.negf %291 : vector<8x32xf32>
    %293 = math.exp %292 : vector<8x32xf32>
    %cst_65 = arith.constant 1.000000e+00 : f32
    %294 = vector.broadcast %cst_65 : f32 to vector<8x32xf32>
    %295 = arith.addf %294, %293 : vector<8x32xf32>
    %296 = arith.divf %294, %295 : vector<8x32xf32>
    %297 = vector.extract_strided_slice %290 {offsets = [0, 32], sizes = [8, 32], strides = [1, 1]} : vector<8x128xf32> to vector<8x32xf32>
    %298 = arith.negf %297 : vector<8x32xf32>
    %299 = math.exp %298 : vector<8x32xf32>
    %cst_66 = arith.constant 1.000000e+00 : f32
    %300 = vector.broadcast %cst_66 : f32 to vector<8x32xf32>
    %301 = arith.addf %300, %299 : vector<8x32xf32>
    %302 = arith.divf %300, %301 : vector<8x32xf32>
    %303 = vector.extract_strided_slice %290 {offsets = [0, 64], sizes = [8, 32], strides = [1, 1]} : vector<8x128xf32> to vector<8x32xf32>
    %304 = math.tanh %303 : vector<8x32xf32>
    %305 = vector.extract_strided_slice %290 {offsets = [0, 96], sizes = [8, 32], strides = [1, 1]} : vector<8x128xf32> to vector<8x32xf32>
    %306 = arith.negf %305 : vector<8x32xf32>
    %307 = math.exp %306 : vector<8x32xf32>
    %cst_67 = arith.constant 1.000000e+00 : f32
    %308 = vector.broadcast %cst_67 : f32 to vector<8x32xf32>
    %309 = arith.addf %308, %307 : vector<8x32xf32>
    %310 = arith.divf %308, %309 : vector<8x32xf32>
    %311 = arith.mulf %302, %262 : vector<8x32xf32>
    %312 = arith.mulf %296, %304 : vector<8x32xf32>
    %313 = arith.addf %311, %312 : vector<8x32xf32>
    %314 = math.tanh %313 : vector<8x32xf32>
    %315 = arith.mulf %310, %314 : vector<8x32xf32>
    %316 = arith.index_cast %285 : i32 to index
    %c0_68 = arith.constant 0 : index
    %c0_69 = arith.constant 0 : index
    %317 = vector.load %arg1[%316, %c0_68, %c0_69] : memref<8x8x128xf32, #tpu.memory_space<vmem>>, vector<1x8x128xf32>
    %318 = vector.shape_cast %317 : vector<1x8x128xf32> to vector<8x128xf32>
    %cst_70 = arith.constant dense<0.000000e+00> : vector<8x128xf32>
    %319 = tpu.matmul %265, %1, %cst_70 {dimension_numbers = #tpu.dot_dimension_numbers<[1], [0], [0], [1], [0, 0, 1, 1], [], []>} : vector<8x32xf32>, vector<32x128xf32>, vector<8x128xf32> -> vector<8x128xf32>
    %320 = arith.addf %318, %319 : vector<8x128xf32>
    %321 = vector.extract_strided_slice %320 {offsets = [0, 0], sizes = [8, 32], strides = [1, 1]} : vector<8x128xf32> to vector<8x32xf32>
    %322 = arith.negf %321 : vector<8x32xf32>
    %323 = math.exp %322 : vector<8x32xf32>
    %cst_71 = arith.constant 1.000000e+00 : f32
    %324 = vector.broadcast %cst_71 : f32 to vector<8x32xf32>
    %325 = arith.addf %324, %323 : vector<8x32xf32>
    %326 = arith.divf %324, %325 : vector<8x32xf32>
    %327 = vector.extract_strided_slice %320 {offsets = [0, 32], sizes = [8, 32], strides = [1, 1]} : vector<8x128xf32> to vector<8x32xf32>
    %328 = arith.negf %327 : vector<8x32xf32>
    %329 = math.exp %328 : vector<8x32xf32>
    %cst_72 = arith.constant 1.000000e+00 : f32
    %330 = vector.broadcast %cst_72 : f32 to vector<8x32xf32>
    %331 = arith.addf %330, %329 : vector<8x32xf32>
    %332 = arith.divf %330, %331 : vector<8x32xf32>
    %333 = vector.extract_strided_slice %320 {offsets = [0, 64], sizes = [8, 32], strides = [1, 1]} : vector<8x128xf32> to vector<8x32xf32>
    %334 = math.tanh %333 : vector<8x32xf32>
    %335 = vector.extract_strided_slice %320 {offsets = [0, 96], sizes = [8, 32], strides = [1, 1]} : vector<8x128xf32> to vector<8x32xf32>
    %336 = arith.negf %335 : vector<8x32xf32>
    %337 = math.exp %336 : vector<8x32xf32>
    %cst_73 = arith.constant 1.000000e+00 : f32
    %338 = vector.broadcast %cst_73 : f32 to vector<8x32xf32>
    %339 = arith.addf %338, %337 : vector<8x32xf32>
    %340 = arith.divf %338, %339 : vector<8x32xf32>
    %341 = arith.mulf %332, %268 : vector<8x32xf32>
    %342 = arith.mulf %326, %334 : vector<8x32xf32>
    %343 = arith.addf %341, %342 : vector<8x32xf32>
    %344 = math.tanh %343 : vector<8x32xf32>
    %345 = arith.mulf %340, %344 : vector<8x32xf32>
    %346 = vector.broadcast %c3_i32 : i32 to vector<8x1xi32>
    %347 = arith.cmpi sgt, %2, %346 : vector<8x1xi32>
    %348 = vector.broadcast %c3_i32 : i32 to vector<8x1xi32>
    %349 = arith.cmpi sge, %348, %4 : vector<8x1xi32>
    %350 = vector.shape_cast %347 : vector<8x1xi1> to vector<8x1xi1>
    %351 = vector.broadcast %350 : vector<8x1xi1> to vector<8x32xi1>
    %352 = arith.select %351, %315, %259 : vector<8x32xi1>, vector<8x32xf32>
    %353 = vector.shape_cast %347 : vector<8x1xi1> to vector<8x1xi1>
    %354 = vector.broadcast %353 : vector<8x1xi1> to vector<8x32xi1>
    %355 = arith.select %354, %313, %262 : vector<8x32xi1>, vector<8x32xf32>
    %356 = vector.shape_cast %349 : vector<8x1xi1> to vector<8x1xi1>
    %357 = vector.broadcast %356 : vector<8x1xi1> to vector<8x32xi1>
    %358 = arith.select %357, %345, %265 : vector<8x32xi1>, vector<8x32xf32>
    %359 = vector.shape_cast %349 : vector<8x1xi1> to vector<8x1xi1>
    %360 = vector.broadcast %359 : vector<8x1xi1> to vector<8x32xi1>
    %361 = arith.select %360, %343, %268 : vector<8x32xi1>, vector<8x32xf32>
    %cst_74 = arith.constant 0.000000e+00 : f32
    %362 = vector.shape_cast %347 : vector<8x1xi1> to vector<8x1xi1>
    %363 = vector.broadcast %362 : vector<8x1xi1> to vector<8x32xi1>
    %364 = vector.broadcast %cst_74 : f32 to vector<8x32xf32>
    %365 = arith.select %363, %315, %364 : vector<8x32xi1>, vector<8x32xf32>
    %366 = arith.index_cast %c3_i32 : i32 to index
    %c0_75 = arith.constant 0 : index
    %c0_76 = arith.constant 0 : index
    %367 = vector.load %arg5[%366, %c0_75, %c0_76] : memref<8x8x32xf32, #tpu.memory_space<vmem>>, vector<1x8x32xf32>
    %368 = vector.shape_cast %367 : vector<1x8x32xf32> to vector<8x32xf32>
    %369 = vector.shape_cast %365 : vector<8x32xf32> to vector<1x8x32xf32>
    tpu.vector_store %arg5[%366, %c0_75, %c0_76], %369 {strides = array<i32>} : memref<8x8x32xf32, #tpu.memory_space<vmem>>, vector<1x8x32xf32>,
    %cst_77 = arith.constant 0.000000e+00 : f32
    %370 = vector.shape_cast %349 : vector<8x1xi1> to vector<8x1xi1>
    %371 = vector.broadcast %370 : vector<8x1xi1> to vector<8x32xi1>
    %372 = vector.broadcast %cst_77 : f32 to vector<8x32xf32>
    %373 = arith.select %371, %345, %372 : vector<8x32xi1>, vector<8x32xf32>
    %374 = arith.index_cast %285 : i32 to index
    %c0_78 = arith.constant 0 : index
    %c0_79 = arith.constant 0 : index
    %375 = vector.load %arg6[%374, %c0_78, %c0_79] : memref<8x8x32xf32, #tpu.memory_space<vmem>>, vector<1x8x32xf32>
    %376 = vector.shape_cast %375 : vector<1x8x32xf32> to vector<8x32xf32>
    %377 = vector.shape_cast %373 : vector<8x32xf32> to vector<1x8x32xf32>
    tpu.vector_store %arg6[%374, %c0_78, %c0_79], %377 {strides = array<i32>} : memref<8x8x32xf32, #tpu.memory_space<vmem>>, vector<1x8x32xf32>,
    %c4_i32 = arith.constant 4 : i32
    %c7_i32_80 = arith.constant 7 : i32
    %378 = arith.subi %c7_i32_80, %c4_i32 : i32
    %379 = arith.index_cast %c4_i32 : i32 to index
    %c0_81 = arith.constant 0 : index
    %c0_82 = arith.constant 0 : index
    %380 = vector.load %arg0[%379, %c0_81, %c0_82] : memref<8x8x128xf32, #tpu.memory_space<vmem>>, vector<1x8x128xf32>
    %381 = vector.shape_cast %380 : vector<1x8x128xf32> to vector<8x128xf32>
    %cst_83 = arith.constant dense<0.000000e+00> : vector<8x128xf32>
    %382 = tpu.matmul %352, %0, %cst_83 {dimension_numbers = #tpu.dot_dimension_numbers<[1], [0], [0], [1], [0, 0, 1, 1], [], []>} : vector<8x32xf32>, vector<32x128xf32>, vector<8x128xf32> -> vector<8x128xf32>
    %383 = arith.addf %381, %382 : vector<8x128xf32>
    %384 = vector.extract_strided_slice %383 {offsets = [0, 0], sizes = [8, 32], strides = [1, 1]} : vector<8x128xf32> to vector<8x32xf32>
    %385 = arith.negf %384 : vector<8x32xf32>
    %386 = math.exp %385 : vector<8x32xf32>
    %cst_84 = arith.constant 1.000000e+00 : f32
    %387 = vector.broadcast %cst_84 : f32 to vector<8x32xf32>
    %388 = arith.addf %387, %386 : vector<8x32xf32>
    %389 = arith.divf %387, %388 : vector<8x32xf32>
    %390 = vector.extract_strided_slice %383 {offsets = [0, 32], sizes = [8, 32], strides = [1, 1]} : vector<8x128xf32> to vector<8x32xf32>
    %391 = arith.negf %390 : vector<8x32xf32>
    %392 = math.exp %391 : vector<8x32xf32>
    %cst_85 = arith.constant 1.000000e+00 : f32
    %393 = vector.broadcast %cst_85 : f32 to vector<8x32xf32>
    %394 = arith.addf %393, %392 : vector<8x32xf32>
    %395 = arith.divf %393, %394 : vector<8x32xf32>
    %396 = vector.extract_strided_slice %383 {offsets = [0, 64], sizes = [8, 32], strides = [1, 1]} : vector<8x128xf32> to vector<8x32xf32>
    %397 = math.tanh %396 : vector<8x32xf32>
    %398 = vector.extract_strided_slice %383 {offsets = [0, 96], sizes = [8, 32], strides = [1, 1]} : vector<8x128xf32> to vector<8x32xf32>
    %399 = arith.negf %398 : vector<8x32xf32>
    %400 = math.exp %399 : vector<8x32xf32>
    %cst_86 = arith.constant 1.000000e+00 : f32
    %401 = vector.broadcast %cst_86 : f32 to vector<8x32xf32>
    %402 = arith.addf %401, %400 : vector<8x32xf32>
    %403 = arith.divf %401, %402 : vector<8x32xf32>
    %404 = arith.mulf %395, %355 : vector<8x32xf32>
    %405 = arith.mulf %389, %397 : vector<8x32xf32>
    %406 = arith.addf %404, %405 : vector<8x32xf32>
    %407 = math.tanh %406 : vector<8x32xf32>
    %408 = arith.mulf %403, %407 : vector<8x32xf32>
    %409 = arith.index_cast %378 : i32 to index
    %c0_87 = arith.constant 0 : index
    %c0_88 = arith.constant 0 : index
    %410 = vector.load %arg1[%409, %c0_87, %c0_88] : memref<8x8x128xf32, #tpu.memory_space<vmem>>, vector<1x8x128xf32>
    %411 = vector.shape_cast %410 : vector<1x8x128xf32> to vector<8x128xf32>
    %cst_89 = arith.constant dense<0.000000e+00> : vector<8x128xf32>
    %412 = tpu.matmul %358, %1, %cst_89 {dimension_numbers = #tpu.dot_dimension_numbers<[1], [0], [0], [1], [0, 0, 1, 1], [], []>} : vector<8x32xf32>, vector<32x128xf32>, vector<8x128xf32> -> vector<8x128xf32>
    %413 = arith.addf %411, %412 : vector<8x128xf32>
    %414 = vector.extract_strided_slice %413 {offsets = [0, 0], sizes = [8, 32], strides = [1, 1]} : vector<8x128xf32> to vector<8x32xf32>
    %415 = arith.negf %414 : vector<8x32xf32>
    %416 = math.exp %415 : vector<8x32xf32>
    %cst_90 = arith.constant 1.000000e+00 : f32
    %417 = vector.broadcast %cst_90 : f32 to vector<8x32xf32>
    %418 = arith.addf %417, %416 : vector<8x32xf32>
    %419 = arith.divf %417, %418 : vector<8x32xf32>
    %420 = vector.extract_strided_slice %413 {offsets = [0, 32], sizes = [8, 32], strides = [1, 1]} : vector<8x128xf32> to vector<8x32xf32>
    %421 = arith.negf %420 : vector<8x32xf32>
    %422 = math.exp %421 : vector<8x32xf32>
    %cst_91 = arith.constant 1.000000e+00 : f32
    %423 = vector.broadcast %cst_91 : f32 to vector<8x32xf32>
    %424 = arith.addf %423, %422 : vector<8x32xf32>
    %425 = arith.divf %423, %424 : vector<8x32xf32>
    %426 = vector.extract_strided_slice %413 {offsets = [0, 64], sizes = [8, 32], strides = [1, 1]} : vector<8x128xf32> to vector<8x32xf32>
    %427 = math.tanh %426 : vector<8x32xf32>
    %428 = vector.extract_strided_slice %413 {offsets = [0, 96], sizes = [8, 32], strides = [1, 1]} : vector<8x128xf32> to vector<8x32xf32>
    %429 = arith.negf %428 : vector<8x32xf32>
    %430 = math.exp %429 : vector<8x32xf32>
    %cst_92 = arith.constant 1.000000e+00 : f32
    %431 = vector.broadcast %cst_92 : f32 to vector<8x32xf32>
    %432 = arith.addf %431, %430 : vector<8x32xf32>
    %433 = arith.divf %431, %432 : vector<8x32xf32>
    %434 = arith.mulf %425, %361 : vector<8x32xf32>
    %435 = arith.mulf %419, %427 : vector<8x32xf32>
    %436 = arith.addf %434, %435 : vector<8x32xf32>
    %437 = math.tanh %436 : vector<8x32xf32>
    %438 = arith.mulf %433, %437 : vector<8x32xf32>
    %439 = vector.broadcast %c4_i32 : i32 to vector<8x1xi32>
    %440 = arith.cmpi sgt, %2, %439 : vector<8x1xi32>
    %441 = vector.broadcast %c4_i32 : i32 to vector<8x1xi32>
    %442 = arith.cmpi sge, %441, %4 : vector<8x1xi32>
    %443 = vector.shape_cast %440 : vector<8x1xi1> to vector<8x1xi1>
    %444 = vector.broadcast %443 : vector<8x1xi1> to vector<8x32xi1>
    %445 = arith.select %444, %408, %352 : vector<8x32xi1>, vector<8x32xf32>
    %446 = vector.shape_cast %440 : vector<8x1xi1> to vector<8x1xi1>
    %447 = vector.broadcast %446 : vector<8x1xi1> to vector<8x32xi1>
    %448 = arith.select %447, %406, %355 : vector<8x32xi1>, vector<8x32xf32>
    %449 = vector.shape_cast %442 : vector<8x1xi1> to vector<8x1xi1>
    %450 = vector.broadcast %449 : vector<8x1xi1> to vector<8x32xi1>
    %451 = arith.select %450, %438, %358 : vector<8x32xi1>, vector<8x32xf32>
    %452 = vector.shape_cast %442 : vector<8x1xi1> to vector<8x1xi1>
    %453 = vector.broadcast %452 : vector<8x1xi1> to vector<8x32xi1>
    %454 = arith.select %453, %436, %361 : vector<8x32xi1>, vector<8x32xf32>
    %cst_93 = arith.constant 0.000000e+00 : f32
    %455 = vector.shape_cast %440 : vector<8x1xi1> to vector<8x1xi1>
    %456 = vector.broadcast %455 : vector<8x1xi1> to vector<8x32xi1>
    %457 = vector.broadcast %cst_93 : f32 to vector<8x32xf32>
    %458 = arith.select %456, %408, %457 : vector<8x32xi1>, vector<8x32xf32>
    %459 = arith.index_cast %c4_i32 : i32 to index
    %c0_94 = arith.constant 0 : index
    %c0_95 = arith.constant 0 : index
    %460 = vector.load %arg5[%459, %c0_94, %c0_95] : memref<8x8x32xf32, #tpu.memory_space<vmem>>, vector<1x8x32xf32>
    %461 = vector.shape_cast %460 : vector<1x8x32xf32> to vector<8x32xf32>
    %462 = vector.shape_cast %458 : vector<8x32xf32> to vector<1x8x32xf32>
    tpu.vector_store %arg5[%459, %c0_94, %c0_95], %462 {strides = array<i32>} : memref<8x8x32xf32, #tpu.memory_space<vmem>>, vector<1x8x32xf32>,
    %cst_96 = arith.constant 0.000000e+00 : f32
    %463 = vector.shape_cast %442 : vector<8x1xi1> to vector<8x1xi1>
    %464 = vector.broadcast %463 : vector<8x1xi1> to vector<8x32xi1>
    %465 = vector.broadcast %cst_96 : f32 to vector<8x32xf32>
    %466 = arith.select %464, %438, %465 : vector<8x32xi1>, vector<8x32xf32>
    %467 = arith.index_cast %378 : i32 to index
    %c0_97 = arith.constant 0 : index
    %c0_98 = arith.constant 0 : index
    %468 = vector.load %arg6[%467, %c0_97, %c0_98] : memref<8x8x32xf32, #tpu.memory_space<vmem>>, vector<1x8x32xf32>
    %469 = vector.shape_cast %468 : vector<1x8x32xf32> to vector<8x32xf32>
    %470 = vector.shape_cast %466 : vector<8x32xf32> to vector<1x8x32xf32>
    tpu.vector_store %arg6[%467, %c0_97, %c0_98], %470 {strides = array<i32>} : memref<8x8x32xf32, #tpu.memory_space<vmem>>, vector<1x8x32xf32>,
    %c5_i32 = arith.constant 5 : i32
    %c7_i32_99 = arith.constant 7 : i32
    %471 = arith.subi %c7_i32_99, %c5_i32 : i32
    %472 = arith.index_cast %c5_i32 : i32 to index
    %c0_100 = arith.constant 0 : index
    %c0_101 = arith.constant 0 : index
    %473 = vector.load %arg0[%472, %c0_100, %c0_101] : memref<8x8x128xf32, #tpu.memory_space<vmem>>, vector<1x8x128xf32>
    %474 = vector.shape_cast %473 : vector<1x8x128xf32> to vector<8x128xf32>
    %cst_102 = arith.constant dense<0.000000e+00> : vector<8x128xf32>
    %475 = tpu.matmul %445, %0, %cst_102 {dimension_numbers = #tpu.dot_dimension_numbers<[1], [0], [0], [1], [0, 0, 1, 1], [], []>} : vector<8x32xf32>, vector<32x128xf32>, vector<8x128xf32> -> vector<8x128xf32>
    %476 = arith.addf %474, %475 : vector<8x128xf32>
    %477 = vector.extract_strided_slice %476 {offsets = [0, 0], sizes = [8, 32], strides = [1, 1]} : vector<8x128xf32> to vector<8x32xf32>
    %478 = arith.negf %477 : vector<8x32xf32>
    %479 = math.exp %478 : vector<8x32xf32>
    %cst_103 = arith.constant 1.000000e+00 : f32
    %480 = vector.broadcast %cst_103 : f32 to vector<8x32xf32>
    %481 = arith.addf %480, %479 : vector<8x32xf32>
    %482 = arith.divf %480, %481 : vector<8x32xf32>
    %483 = vector.extract_strided_slice %476 {offsets = [0, 32], sizes = [8, 32], strides = [1, 1]} : vector<8x128xf32> to vector<8x32xf32>
    %484 = arith.negf %483 : vector<8x32xf32>
    %485 = math.exp %484 : vector<8x32xf32>
    %cst_104 = arith.constant 1.000000e+00 : f32
    %486 = vector.broadcast %cst_104 : f32 to vector<8x32xf32>
    %487 = arith.addf %486, %485 : vector<8x32xf32>
    %488 = arith.divf %486, %487 : vector<8x32xf32>
    %489 = vector.extract_strided_slice %476 {offsets = [0, 64], sizes = [8, 32], strides = [1, 1]} : vector<8x128xf32> to vector<8x32xf32>
    %490 = math.tanh %489 : vector<8x32xf32>
    %491 = vector.extract_strided_slice %476 {offsets = [0, 96], sizes = [8, 32], strides = [1, 1]} : vector<8x128xf32> to vector<8x32xf32>
    %492 = arith.negf %491 : vector<8x32xf32>
    %493 = math.exp %492 : vector<8x32xf32>
    %cst_105 = arith.constant 1.000000e+00 : f32
    %494 = vector.broadcast %cst_105 : f32 to vector<8x32xf32>
    %495 = arith.addf %494, %493 : vector<8x32xf32>
    %496 = arith.divf %494, %495 : vector<8x32xf32>
    %497 = arith.mulf %488, %448 : vector<8x32xf32>
    %498 = arith.mulf %482, %490 : vector<8x32xf32>
    %499 = arith.addf %497, %498 : vector<8x32xf32>
    %500 = math.tanh %499 : vector<8x32xf32>
    %501 = arith.mulf %496, %500 : vector<8x32xf32>
    %502 = arith.index_cast %471 : i32 to index
    %c0_106 = arith.constant 0 : index
    %c0_107 = arith.constant 0 : index
    %503 = vector.load %arg1[%502, %c0_106, %c0_107] : memref<8x8x128xf32, #tpu.memory_space<vmem>>, vector<1x8x128xf32>
    %504 = vector.shape_cast %503 : vector<1x8x128xf32> to vector<8x128xf32>
    %cst_108 = arith.constant dense<0.000000e+00> : vector<8x128xf32>
    %505 = tpu.matmul %451, %1, %cst_108 {dimension_numbers = #tpu.dot_dimension_numbers<[1], [0], [0], [1], [0, 0, 1, 1], [], []>} : vector<8x32xf32>, vector<32x128xf32>, vector<8x128xf32> -> vector<8x128xf32>
    %506 = arith.addf %504, %505 : vector<8x128xf32>
    %507 = vector.extract_strided_slice %506 {offsets = [0, 0], sizes = [8, 32], strides = [1, 1]} : vector<8x128xf32> to vector<8x32xf32>
    %508 = arith.negf %507 : vector<8x32xf32>
    %509 = math.exp %508 : vector<8x32xf32>
    %cst_109 = arith.constant 1.000000e+00 : f32
    %510 = vector.broadcast %cst_109 : f32 to vector<8x32xf32>
    %511 = arith.addf %510, %509 : vector<8x32xf32>
    %512 = arith.divf %510, %511 : vector<8x32xf32>
    %513 = vector.extract_strided_slice %506 {offsets = [0, 32], sizes = [8, 32], strides = [1, 1]} : vector<8x128xf32> to vector<8x32xf32>
    %514 = arith.negf %513 : vector<8x32xf32>
    %515 = math.exp %514 : vector<8x32xf32>
    %cst_110 = arith.constant 1.000000e+00 : f32
    %516 = vector.broadcast %cst_110 : f32 to vector<8x32xf32>
    %517 = arith.addf %516, %515 : vector<8x32xf32>
    %518 = arith.divf %516, %517 : vector<8x32xf32>
    %519 = vector.extract_strided_slice %506 {offsets = [0, 64], sizes = [8, 32], strides = [1, 1]} : vector<8x128xf32> to vector<8x32xf32>
    %520 = math.tanh %519 : vector<8x32xf32>
    %521 = vector.extract_strided_slice %506 {offsets = [0, 96], sizes = [8, 32], strides = [1, 1]} : vector<8x128xf32> to vector<8x32xf32>
    %522 = arith.negf %521 : vector<8x32xf32>
    %523 = math.exp %522 : vector<8x32xf32>
    %cst_111 = arith.constant 1.000000e+00 : f32
    %524 = vector.broadcast %cst_111 : f32 to vector<8x32xf32>
    %525 = arith.addf %524, %523 : vector<8x32xf32>
    %526 = arith.divf %524, %525 : vector<8x32xf32>
    %527 = arith.mulf %518, %454 : vector<8x32xf32>
    %528 = arith.mulf %512, %520 : vector<8x32xf32>
    %529 = arith.addf %527, %528 : vector<8x32xf32>
    %530 = math.tanh %529 : vector<8x32xf32>
    %531 = arith.mulf %526, %530 : vector<8x32xf32>
    %532 = vector.broadcast %c5_i32 : i32 to vector<8x1xi32>
    %533 = arith.cmpi sgt, %2, %532 : vector<8x1xi32>
    %534 = vector.broadcast %c5_i32 : i32 to vector<8x1xi32>
    %535 = arith.cmpi sge, %534, %4 : vector<8x1xi32>
    %536 = vector.shape_cast %533 : vector<8x1xi1> to vector<8x1xi1>
    %537 = vector.broadcast %536 : vector<8x1xi1> to vector<8x32xi1>
    %538 = arith.select %537, %501, %445 : vector<8x32xi1>, vector<8x32xf32>
    %539 = vector.shape_cast %533 : vector<8x1xi1> to vector<8x1xi1>
    %540 = vector.broadcast %539 : vector<8x1xi1> to vector<8x32xi1>
    %541 = arith.select %540, %499, %448 : vector<8x32xi1>, vector<8x32xf32>
    %542 = vector.shape_cast %535 : vector<8x1xi1> to vector<8x1xi1>
    %543 = vector.broadcast %542 : vector<8x1xi1> to vector<8x32xi1>
    %544 = arith.select %543, %531, %451 : vector<8x32xi1>, vector<8x32xf32>
    %545 = vector.shape_cast %535 : vector<8x1xi1> to vector<8x1xi1>
    %546 = vector.broadcast %545 : vector<8x1xi1> to vector<8x32xi1>
    %547 = arith.select %546, %529, %454 : vector<8x32xi1>, vector<8x32xf32>
    %cst_112 = arith.constant 0.000000e+00 : f32
    %548 = vector.shape_cast %533 : vector<8x1xi1> to vector<8x1xi1>
    %549 = vector.broadcast %548 : vector<8x1xi1> to vector<8x32xi1>
    %550 = vector.broadcast %cst_112 : f32 to vector<8x32xf32>
    %551 = arith.select %549, %501, %550 : vector<8x32xi1>, vector<8x32xf32>
    %552 = arith.index_cast %c5_i32 : i32 to index
    %c0_113 = arith.constant 0 : index
    %c0_114 = arith.constant 0 : index
    %553 = vector.load %arg5[%552, %c0_113, %c0_114] : memref<8x8x32xf32, #tpu.memory_space<vmem>>, vector<1x8x32xf32>
    %554 = vector.shape_cast %553 : vector<1x8x32xf32> to vector<8x32xf32>
    %555 = vector.shape_cast %551 : vector<8x32xf32> to vector<1x8x32xf32>
    tpu.vector_store %arg5[%552, %c0_113, %c0_114], %555 {strides = array<i32>} : memref<8x8x32xf32, #tpu.memory_space<vmem>>, vector<1x8x32xf32>,
    %cst_115 = arith.constant 0.000000e+00 : f32
    %556 = vector.shape_cast %535 : vector<8x1xi1> to vector<8x1xi1>
    %557 = vector.broadcast %556 : vector<8x1xi1> to vector<8x32xi1>
    %558 = vector.broadcast %cst_115 : f32 to vector<8x32xf32>
    %559 = arith.select %557, %531, %558 : vector<8x32xi1>, vector<8x32xf32>
    %560 = arith.index_cast %471 : i32 to index
    %c0_116 = arith.constant 0 : index
    %c0_117 = arith.constant 0 : index
    %561 = vector.load %arg6[%560, %c0_116, %c0_117] : memref<8x8x32xf32, #tpu.memory_space<vmem>>, vector<1x8x32xf32>
    %562 = vector.shape_cast %561 : vector<1x8x32xf32> to vector<8x32xf32>
    %563 = vector.shape_cast %559 : vector<8x32xf32> to vector<1x8x32xf32>
    tpu.vector_store %arg6[%560, %c0_116, %c0_117], %563 {strides = array<i32>} : memref<8x8x32xf32, #tpu.memory_space<vmem>>, vector<1x8x32xf32>,
    %c6_i32 = arith.constant 6 : i32
    %c7_i32_118 = arith.constant 7 : i32
    %564 = arith.subi %c7_i32_118, %c6_i32 : i32
    %565 = arith.index_cast %c6_i32 : i32 to index
    %c0_119 = arith.constant 0 : index
    %c0_120 = arith.constant 0 : index
    %566 = vector.load %arg0[%565, %c0_119, %c0_120] : memref<8x8x128xf32, #tpu.memory_space<vmem>>, vector<1x8x128xf32>
    %567 = vector.shape_cast %566 : vector<1x8x128xf32> to vector<8x128xf32>
    %cst_121 = arith.constant dense<0.000000e+00> : vector<8x128xf32>
    %568 = tpu.matmul %538, %0, %cst_121 {dimension_numbers = #tpu.dot_dimension_numbers<[1], [0], [0], [1], [0, 0, 1, 1], [], []>} : vector<8x32xf32>, vector<32x128xf32>, vector<8x128xf32> -> vector<8x128xf32>
    %569 = arith.addf %567, %568 : vector<8x128xf32>
    %570 = vector.extract_strided_slice %569 {offsets = [0, 0], sizes = [8, 32], strides = [1, 1]} : vector<8x128xf32> to vector<8x32xf32>
    %571 = arith.negf %570 : vector<8x32xf32>
    %572 = math.exp %571 : vector<8x32xf32>
    %cst_122 = arith.constant 1.000000e+00 : f32
    %573 = vector.broadcast %cst_122 : f32 to vector<8x32xf32>
    %574 = arith.addf %573, %572 : vector<8x32xf32>
    %575 = arith.divf %573, %574 : vector<8x32xf32>
    %576 = vector.extract_strided_slice %569 {offsets = [0, 32], sizes = [8, 32], strides = [1, 1]} : vector<8x128xf32> to vector<8x32xf32>
    %577 = arith.negf %576 : vector<8x32xf32>
    %578 = math.exp %577 : vector<8x32xf32>
    %cst_123 = arith.constant 1.000000e+00 : f32
    %579 = vector.broadcast %cst_123 : f32 to vector<8x32xf32>
    %580 = arith.addf %579, %578 : vector<8x32xf32>
    %581 = arith.divf %579, %580 : vector<8x32xf32>
    %582 = vector.extract_strided_slice %569 {offsets = [0, 64], sizes = [8, 32], strides = [1, 1]} : vector<8x128xf32> to vector<8x32xf32>
    %583 = math.tanh %582 : vector<8x32xf32>
    %584 = vector.extract_strided_slice %569 {offsets = [0, 96], sizes = [8, 32], strides = [1, 1]} : vector<8x128xf32> to vector<8x32xf32>
    %585 = arith.negf %584 : vector<8x32xf32>
    %586 = math.exp %585 : vector<8x32xf32>
    %cst_124 = arith.constant 1.000000e+00 : f32
    %587 = vector.broadcast %cst_124 : f32 to vector<8x32xf32>
    %588 = arith.addf %587, %586 : vector<8x32xf32>
    %589 = arith.divf %587, %588 : vector<8x32xf32>
    %590 = arith.mulf %581, %541 : vector<8x32xf32>
    %591 = arith.mulf %575, %583 : vector<8x32xf32>
    %592 = arith.addf %590, %591 : vector<8x32xf32>
    %593 = math.tanh %592 : vector<8x32xf32>
    %594 = arith.mulf %589, %593 : vector<8x32xf32>
    %595 = arith.index_cast %564 : i32 to index
    %c0_125 = arith.constant 0 : index
    %c0_126 = arith.constant 0 : index
    %596 = vector.load %arg1[%595, %c0_125, %c0_126] : memref<8x8x128xf32, #tpu.memory_space<vmem>>, vector<1x8x128xf32>
    %597 = vector.shape_cast %596 : vector<1x8x128xf32> to vector<8x128xf32>
    %cst_127 = arith.constant dense<0.000000e+00> : vector<8x128xf32>
    %598 = tpu.matmul %544, %1, %cst_127 {dimension_numbers = #tpu.dot_dimension_numbers<[1], [0], [0], [1], [0, 0, 1, 1], [], []>} : vector<8x32xf32>, vector<32x128xf32>, vector<8x128xf32> -> vector<8x128xf32>
    %599 = arith.addf %597, %598 : vector<8x128xf32>
    %600 = vector.extract_strided_slice %599 {offsets = [0, 0], sizes = [8, 32], strides = [1, 1]} : vector<8x128xf32> to vector<8x32xf32>
    %601 = arith.negf %600 : vector<8x32xf32>
    %602 = math.exp %601 : vector<8x32xf32>
    %cst_128 = arith.constant 1.000000e+00 : f32
    %603 = vector.broadcast %cst_128 : f32 to vector<8x32xf32>
    %604 = arith.addf %603, %602 : vector<8x32xf32>
    %605 = arith.divf %603, %604 : vector<8x32xf32>
    %606 = vector.extract_strided_slice %599 {offsets = [0, 32], sizes = [8, 32], strides = [1, 1]} : vector<8x128xf32> to vector<8x32xf32>
    %607 = arith.negf %606 : vector<8x32xf32>
    %608 = math.exp %607 : vector<8x32xf32>
    %cst_129 = arith.constant 1.000000e+00 : f32
    %609 = vector.broadcast %cst_129 : f32 to vector<8x32xf32>
    %610 = arith.addf %609, %608 : vector<8x32xf32>
    %611 = arith.divf %609, %610 : vector<8x32xf32>
    %612 = vector.extract_strided_slice %599 {offsets = [0, 64], sizes = [8, 32], strides = [1, 1]} : vector<8x128xf32> to vector<8x32xf32>
    %613 = math.tanh %612 : vector<8x32xf32>
    %614 = vector.extract_strided_slice %599 {offsets = [0, 96], sizes = [8, 32], strides = [1, 1]} : vector<8x128xf32> to vector<8x32xf32>
    %615 = arith.negf %614 : vector<8x32xf32>
    %616 = math.exp %615 : vector<8x32xf32>
    %cst_130 = arith.constant 1.000000e+00 : f32
    %617 = vector.broadcast %cst_130 : f32 to vector<8x32xf32>
    %618 = arith.addf %617, %616 : vector<8x32xf32>
    %619 = arith.divf %617, %618 : vector<8x32xf32>
    %620 = arith.mulf %611, %547 : vector<8x32xf32>
    %621 = arith.mulf %605, %613 : vector<8x32xf32>
    %622 = arith.addf %620, %621 : vector<8x32xf32>
    %623 = math.tanh %622 : vector<8x32xf32>
    %624 = arith.mulf %619, %623 : vector<8x32xf32>
    %625 = vector.broadcast %c6_i32 : i32 to vector<8x1xi32>
    %626 = arith.cmpi sgt, %2, %625 : vector<8x1xi32>
    %627 = vector.broadcast %c6_i32 : i32 to vector<8x1xi32>
    %628 = arith.cmpi sge, %627, %4 : vector<8x1xi32>
    %629 = vector.shape_cast %626 : vector<8x1xi1> to vector<8x1xi1>
    %630 = vector.broadcast %629 : vector<8x1xi1> to vector<8x32xi1>
    %631 = arith.select %630, %594, %538 : vector<8x32xi1>, vector<8x32xf32>
    %632 = vector.shape_cast %626 : vector<8x1xi1> to vector<8x1xi1>
    %633 = vector.broadcast %632 : vector<8x1xi1> to vector<8x32xi1>
    %634 = arith.select %633, %592, %541 : vector<8x32xi1>, vector<8x32xf32>
    %635 = vector.shape_cast %628 : vector<8x1xi1> to vector<8x1xi1>
    %636 = vector.broadcast %635 : vector<8x1xi1> to vector<8x32xi1>
    %637 = arith.select %636, %624, %544 : vector<8x32xi1>, vector<8x32xf32>
    %638 = vector.shape_cast %628 : vector<8x1xi1> to vector<8x1xi1>
    %639 = vector.broadcast %638 : vector<8x1xi1> to vector<8x32xi1>
    %640 = arith.select %639, %622, %547 : vector<8x32xi1>, vector<8x32xf32>
    %cst_131 = arith.constant 0.000000e+00 : f32
    %641 = vector.shape_cast %626 : vector<8x1xi1> to vector<8x1xi1>
    %642 = vector.broadcast %641 : vector<8x1xi1> to vector<8x32xi1>
    %643 = vector.broadcast %cst_131 : f32 to vector<8x32xf32>
    %644 = arith.select %642, %594, %643 : vector<8x32xi1>, vector<8x32xf32>
    %645 = arith.index_cast %c6_i32 : i32 to index
    %c0_132 = arith.constant 0 : index
    %c0_133 = arith.constant 0 : index
    %646 = vector.load %arg5[%645, %c0_132, %c0_133] : memref<8x8x32xf32, #tpu.memory_space<vmem>>, vector<1x8x32xf32>
    %647 = vector.shape_cast %646 : vector<1x8x32xf32> to vector<8x32xf32>
    %648 = vector.shape_cast %644 : vector<8x32xf32> to vector<1x8x32xf32>
    tpu.vector_store %arg5[%645, %c0_132, %c0_133], %648 {strides = array<i32>} : memref<8x8x32xf32, #tpu.memory_space<vmem>>, vector<1x8x32xf32>,
    %cst_134 = arith.constant 0.000000e+00 : f32
    %649 = vector.shape_cast %628 : vector<8x1xi1> to vector<8x1xi1>
    %650 = vector.broadcast %649 : vector<8x1xi1> to vector<8x32xi1>
    %651 = vector.broadcast %cst_134 : f32 to vector<8x32xf32>
    %652 = arith.select %650, %624, %651 : vector<8x32xi1>, vector<8x32xf32>
    %653 = arith.index_cast %564 : i32 to index
    %c0_135 = arith.constant 0 : index
    %c0_136 = arith.constant 0 : index
    %654 = vector.load %arg6[%653, %c0_135, %c0_136] : memref<8x8x32xf32, #tpu.memory_space<vmem>>, vector<1x8x32xf32>
    %655 = vector.shape_cast %654 : vector<1x8x32xf32> to vector<8x32xf32>
    %656 = vector.shape_cast %652 : vector<8x32xf32> to vector<1x8x32xf32>
    tpu.vector_store %arg6[%653, %c0_135, %c0_136], %656 {strides = array<i32>} : memref<8x8x32xf32, #tpu.memory_space<vmem>>, vector<1x8x32xf32>,
    %c7_i32_137 = arith.constant 7 : i32
    %c7_i32_138 = arith.constant 7 : i32
    %657 = arith.subi %c7_i32_138, %c7_i32_137 : i32
    %658 = arith.index_cast %c7_i32_137 : i32 to index
    %c0_139 = arith.constant 0 : index
    %c0_140 = arith.constant 0 : index
    %659 = vector.load %arg0[%658, %c0_139, %c0_140] : memref<8x8x128xf32, #tpu.memory_space<vmem>>, vector<1x8x128xf32>
    %660 = vector.shape_cast %659 : vector<1x8x128xf32> to vector<8x128xf32>
    %cst_141 = arith.constant dense<0.000000e+00> : vector<8x128xf32>
    %661 = tpu.matmul %631, %0, %cst_141 {dimension_numbers = #tpu.dot_dimension_numbers<[1], [0], [0], [1], [0, 0, 1, 1], [], []>} : vector<8x32xf32>, vector<32x128xf32>, vector<8x128xf32> -> vector<8x128xf32>
    %662 = arith.addf %660, %661 : vector<8x128xf32>
    %663 = vector.extract_strided_slice %662 {offsets = [0, 0], sizes = [8, 32], strides = [1, 1]} : vector<8x128xf32> to vector<8x32xf32>
    %664 = arith.negf %663 : vector<8x32xf32>
    %665 = math.exp %664 : vector<8x32xf32>
    %cst_142 = arith.constant 1.000000e+00 : f32
    %666 = vector.broadcast %cst_142 : f32 to vector<8x32xf32>
    %667 = arith.addf %666, %665 : vector<8x32xf32>
    %668 = arith.divf %666, %667 : vector<8x32xf32>
    %669 = vector.extract_strided_slice %662 {offsets = [0, 32], sizes = [8, 32], strides = [1, 1]} : vector<8x128xf32> to vector<8x32xf32>
    %670 = arith.negf %669 : vector<8x32xf32>
    %671 = math.exp %670 : vector<8x32xf32>
    %cst_143 = arith.constant 1.000000e+00 : f32
    %672 = vector.broadcast %cst_143 : f32 to vector<8x32xf32>
    %673 = arith.addf %672, %671 : vector<8x32xf32>
    %674 = arith.divf %672, %673 : vector<8x32xf32>
    %675 = vector.extract_strided_slice %662 {offsets = [0, 64], sizes = [8, 32], strides = [1, 1]} : vector<8x128xf32> to vector<8x32xf32>
    %676 = math.tanh %675 : vector<8x32xf32>
    %677 = vector.extract_strided_slice %662 {offsets = [0, 96], sizes = [8, 32], strides = [1, 1]} : vector<8x128xf32> to vector<8x32xf32>
    %678 = arith.negf %677 : vector<8x32xf32>
    %679 = math.exp %678 : vector<8x32xf32>
    %cst_144 = arith.constant 1.000000e+00 : f32
    %680 = vector.broadcast %cst_144 : f32 to vector<8x32xf32>
    %681 = arith.addf %680, %679 : vector<8x32xf32>
    %682 = arith.divf %680, %681 : vector<8x32xf32>
    %683 = arith.mulf %674, %634 : vector<8x32xf32>
    %684 = arith.mulf %668, %676 : vector<8x32xf32>
    %685 = arith.addf %683, %684 : vector<8x32xf32>
    %686 = math.tanh %685 : vector<8x32xf32>
    %687 = arith.mulf %682, %686 : vector<8x32xf32>
    %688 = arith.index_cast %657 : i32 to index
    %c0_145 = arith.constant 0 : index
    %c0_146 = arith.constant 0 : index
    %689 = vector.load %arg1[%688, %c0_145, %c0_146] : memref<8x8x128xf32, #tpu.memory_space<vmem>>, vector<1x8x128xf32>
    %690 = vector.shape_cast %689 : vector<1x8x128xf32> to vector<8x128xf32>
    %cst_147 = arith.constant dense<0.000000e+00> : vector<8x128xf32>
    %691 = tpu.matmul %637, %1, %cst_147 {dimension_numbers = #tpu.dot_dimension_numbers<[1], [0], [0], [1], [0, 0, 1, 1], [], []>} : vector<8x32xf32>, vector<32x128xf32>, vector<8x128xf32> -> vector<8x128xf32>
    %692 = arith.addf %690, %691 : vector<8x128xf32>
    %693 = vector.extract_strided_slice %692 {offsets = [0, 0], sizes = [8, 32], strides = [1, 1]} : vector<8x128xf32> to vector<8x32xf32>
    %694 = arith.negf %693 : vector<8x32xf32>
    %695 = math.exp %694 : vector<8x32xf32>
    %cst_148 = arith.constant 1.000000e+00 : f32
    %696 = vector.broadcast %cst_148 : f32 to vector<8x32xf32>
    %697 = arith.addf %696, %695 : vector<8x32xf32>
    %698 = arith.divf %696, %697 : vector<8x32xf32>
    %699 = vector.extract_strided_slice %692 {offsets = [0, 32], sizes = [8, 32], strides = [1, 1]} : vector<8x128xf32> to vector<8x32xf32>
    %700 = arith.negf %699 : vector<8x32xf32>
    %701 = math.exp %700 : vector<8x32xf32>
    %cst_149 = arith.constant 1.000000e+00 : f32
    %702 = vector.broadcast %cst_149 : f32 to vector<8x32xf32>
    %703 = arith.addf %702, %701 : vector<8x32xf32>
    %704 = arith.divf %702, %703 : vector<8x32xf32>
    %705 = vector.extract_strided_slice %692 {offsets = [0, 64], sizes = [8, 32], strides = [1, 1]} : vector<8x128xf32> to vector<8x32xf32>
    %706 = math.tanh %705 : vector<8x32xf32>
    %707 = vector.extract_strided_slice %692 {offsets = [0, 96], sizes = [8, 32], strides = [1, 1]} : vector<8x128xf32> to vector<8x32xf32>
    %708 = arith.negf %707 : vector<8x32xf32>
    %709 = math.exp %708 : vector<8x32xf32>
    %cst_150 = arith.constant 1.000000e+00 : f32
    %710 = vector.broadcast %cst_150 : f32 to vector<8x32xf32>
    %711 = arith.addf %710, %709 : vector<8x32xf32>
    %712 = arith.divf %710, %711 : vector<8x32xf32>
    %713 = arith.mulf %704, %640 : vector<8x32xf32>
    %714 = arith.mulf %698, %706 : vector<8x32xf32>
    %715 = arith.addf %713, %714 : vector<8x32xf32>
    %716 = math.tanh %715 : vector<8x32xf32>
    %717 = arith.mulf %712, %716 : vector<8x32xf32>
    %718 = vector.broadcast %c7_i32_137 : i32 to vector<8x1xi32>
    %719 = arith.cmpi sgt, %2, %718 : vector<8x1xi32>
    %720 = vector.broadcast %c7_i32_137 : i32 to vector<8x1xi32>
    %721 = arith.cmpi sge, %720, %4 : vector<8x1xi32>
    %722 = vector.shape_cast %719 : vector<8x1xi1> to vector<8x1xi1>
    %723 = vector.broadcast %722 : vector<8x1xi1> to vector<8x32xi1>
    %724 = arith.select %723, %687, %631 : vector<8x32xi1>, vector<8x32xf32>
    %725 = vector.shape_cast %719 : vector<8x1xi1> to vector<8x1xi1>
    %726 = vector.broadcast %725 : vector<8x1xi1> to vector<8x32xi1>
    %727 = arith.select %726, %685, %634 : vector<8x32xi1>, vector<8x32xf32>
    %728 = vector.shape_cast %721 : vector<8x1xi1> to vector<8x1xi1>
    %729 = vector.broadcast %728 : vector<8x1xi1> to vector<8x32xi1>
    %730 = arith.select %729, %717, %637 : vector<8x32xi1>, vector<8x32xf32>
    %731 = vector.shape_cast %721 : vector<8x1xi1> to vector<8x1xi1>
    %732 = vector.broadcast %731 : vector<8x1xi1> to vector<8x32xi1>
    %733 = arith.select %732, %715, %640 : vector<8x32xi1>, vector<8x32xf32>
    %cst_151 = arith.constant 0.000000e+00 : f32
    %734 = vector.shape_cast %719 : vector<8x1xi1> to vector<8x1xi1>
    %735 = vector.broadcast %734 : vector<8x1xi1> to vector<8x32xi1>
    %736 = vector.broadcast %cst_151 : f32 to vector<8x32xf32>
    %737 = arith.select %735, %687, %736 : vector<8x32xi1>, vector<8x32xf32>
    %738 = arith.index_cast %c7_i32_137 : i32 to index
    %c0_152 = arith.constant 0 : index
    %c0_153 = arith.constant 0 : index
    %739 = vector.load %arg5[%738, %c0_152, %c0_153] : memref<8x8x32xf32, #tpu.memory_space<vmem>>, vector<1x8x32xf32>
    %740 = vector.shape_cast %739 : vector<1x8x32xf32> to vector<8x32xf32>
    %741 = vector.shape_cast %737 : vector<8x32xf32> to vector<1x8x32xf32>
    tpu.vector_store %arg5[%738, %c0_152, %c0_153], %741 {strides = array<i32>} : memref<8x8x32xf32, #tpu.memory_space<vmem>>, vector<1x8x32xf32>,
    %cst_154 = arith.constant 0.000000e+00 : f32
    %742 = vector.shape_cast %721 : vector<8x1xi1> to vector<8x1xi1>
    %743 = vector.broadcast %742 : vector<8x1xi1> to vector<8x32xi1>
    %744 = vector.broadcast %cst_154 : f32 to vector<8x32xf32>
    %745 = arith.select %743, %717, %744 : vector<8x32xi1>, vector<8x32xf32>
    %746 = arith.index_cast %657 : i32 to index
    %c0_155 = arith.constant 0 : index
    %c0_156 = arith.constant 0 : index
    %747 = vector.load %arg6[%746, %c0_155, %c0_156] : memref<8x8x32xf32, #tpu.memory_space<vmem>>, vector<1x8x32xf32>
    %748 = vector.shape_cast %747 : vector<1x8x32xf32> to vector<8x32xf32>
    %749 = vector.shape_cast %745 : vector<8x32xf32> to vector<1x8x32xf32>
    tpu.vector_store %arg6[%746, %c0_155, %c0_156], %749 {strides = array<i32>} : memref<8x8x32xf32, #tpu.memory_space<vmem>>, vector<1x8x32xf32>,
    %c8_i32_157 = arith.constant 8 : i32
    %c0_158 = arith.constant 0 : index
    %c0_159 = arith.constant 0 : index
    %750 = vector.load %arg7[%c0_158, %c0_159] : memref<8x32xf32, #tpu.memory_space<vmem>>, vector<8x32xf32>
    tpu.vector_store %arg7[%c0_158, %c0_159], %724 {strides = array<i32>} : memref<8x32xf32, #tpu.memory_space<vmem>>, vector<8x32xf32>,
    %c0_160 = arith.constant 0 : index
    %c0_161 = arith.constant 0 : index
    %751 = vector.load %arg8[%c0_160, %c0_161] : memref<8x32xf32, #tpu.memory_space<vmem>>, vector<8x32xf32>
    tpu.vector_store %arg8[%c0_160, %c0_161], %730 {strides = array<i32>} : memref<8x32xf32, #tpu.memory_space<vmem>>, vector<8x32xf32>,
    return
  }
}

</mosaic_0001>

<bundles_post_ra>
// kernel: tpu_custom_call.1
= control target key start
LH: loop header
LB: loop body
LE: loop exit
PB: predicated region body
PF: predicated region fallthrough
CT: control target
= control target key end

     0   :  { %14 = vsyncpa [#allocation3], 0  ;;  %s3528_s0 = inlined_call_operand.hbm [shape: f32[8,8,128], index: 0, kind: input, shape index: {}]   ;;  %s3529_s1 = inlined_call_operand.hbm [shape: f32[8,8,128], index: 1, kind: input, shape index: {}]   ;;  %s3530_s2 = inlined_call_operand.hbm [shape: f32[32,128], index: 2, kind: input, shape index: {}]   ;;  %s3531_s3 = inlined_call_operand.hbm [shape: f32[32,128], index: 3, kind: input, shape index: {}]   ;;  %s3532_s4 = inlined_call_operand.vmem [shape: s32[8,1], index: 4, kind: input, shape index: {}]   ;;  %s3533_s5 = inlined_call_operand.hbm [shape: f32[8,8,32], index: 5, kind: output, shape index: {0}]   ;;  %s3534_s6 = inlined_call_operand.hbm [shape: f32[8,8,32], index: 6, kind: output, shape index: {1}]   ;;  %s3535_s7 = inlined_call_operand.hbm [shape: f32[8,32], index: 7, kind: output, shape index: {2}]   ;;  %s3536_s8 = inlined_call_operand.hbm [shape: f32[8,32], index: 8, kind: output, shape index: {3}]  }
   0x1   :  { %15 = vsyncpa [#allocation6], 0 }
   0x2   :  { %16 = vsyncpa [#allocation9], 0 }
   0x3   :  { %17 = vsyncpa [#allocation4], 0 }
   0x4   :  { %18 = vsyncpa [#allocation12], 0 }
   0x5   :  { %19 = vsyncpa [#allocation15], 0  ;;  %s2733_s27 = smov [#allocation5]   ;;  %s2734_s29 = smov [#allocation2]  }
   0x6   :  { %s37_s28 = sshll.u32 %s2733_s27, 4  ;;  %s25_s30 = sshll.u32 %s2734_s29, 4  ;;  %s38_s28 = int_to_ptr.vmem [resolvable:$true] %s37_s28  ;;  %s2794_s30 = int_to_ptr.vmem [resolvable:$true] %s25_s30 }
   0x7   :  { %s2545_s11 = scalar_lea.hbm %s3529_s1, 1024 }
   0x8   :  { %p2546_p0 = scmp.ne.s32.totalorder %s3529_s1, %s2545_s11  ;;  %p2549_p1 = scmp.lt.u32.totalorder %s2545_s11, %s3529_s1 }
   0xa   :  { %p2551_p2 = pnand %p2549_p1, %p2546_p0 }
   0xc   :  { %2554 = shalt.err (!%p2551_p2)
}
   0xd   :  { %s2555_s16 = scalar_lea.vmem %s38_s28, 1024  ;;  %p2560_p4 = scmp.lt.s32.totalorder %s38_s28, %s38_s28 }
   0xe   :  { %p2556_p3 = scmp.ne.s32.totalorder %s38_s28, %s2555_s16  ;;  %p2561_p5 = scmp.lt.s32.totalorder %s2555_s16, %s2555_s16 }
  0x10   :  { %p2562_p6 = por %p2561_p5, %p2560_p4 }
  0x12   :  { %p2563_p7 = pnand %p2562_p6, %p2556_p3 }
  0x14   :  { %2566 = shalt.err (!%p2563_p7)
}
  0x15   :  { %s2735_s17 = smov 128   ;;  %s2736_s18 = smov 8  }
  0x16   :  { %43 = dma.hbm_to_vmem [thread:$0]  %s3529_s1, 1024, %s38_s28, [#allocation6], %s2735_s17, %s2735_s17, %s2736_s18  }
  0x17   :  { %s2567_s23 = scalar_lea.hbm %s3528_s0, 1024 }
  0x18   :  { %p2568_p8 = scmp.ne.s32.totalorder %s3528_s0, %s2567_s23  ;;  %p2571_p9 = scmp.lt.u32.totalorder %s2567_s23, %s3528_s0 }
  0x1a   :  { %p2573_p10 = pnand %p2571_p9, %p2568_p8 }
  0x1c   :  { %2576 = shalt.err (!%p2573_p10)
}
  0x1d   :  { %s2577_s29 = scalar_lea.vmem %s2794_s30, 1024  ;;  %p2582_p12 = scmp.lt.s32.totalorder %s2794_s30, %s2794_s30 }
  0x1e   :  { %p2578_p11 = scmp.ne.s32.totalorder %s2794_s30, %s2577_s29  ;;  %p2583_p13 = scmp.lt.s32.totalorder %s2577_s29, %s2577_s29 }
  0x20   :  { %p2584_p0 = por %p2583_p13, %p2582_p12 }
  0x22   :  { %p2585_p1 = pnand %p2584_p0, %p2578_p11 }
  0x24   :  { %2588 = shalt.err (!%p2585_p1)
}
  0x25   :  { %31 = dma.hbm_to_vmem [thread:$0]  %s3528_s0, 1024, %s2794_s30, [#allocation3], %s2735_s17, %s2735_s17, %s2736_s18  }
  0x26   :  { %s2737_s9 = smov [#allocation7]   ;;  %s2738_s11 = smov [#allocation8]  }
  0x27   :  { %s49_s10 = sshll.u32 %s2737_s9, 4  ;;  %s61_s12 = sshll.u32 %s2738_s11, 4  ;;  %s50_s10 = int_to_ptr.vmem [resolvable:$true] %s49_s10  ;;  %s2831_s12 = int_to_ptr.vmem [resolvable:$true] %s61_s12 }
  0x28   :  { %s2589_s15 = scalar_lea.hbm %s3530_s2, 512 }
  0x29   :  { %p2590_p2 = scmp.ne.s32.totalorder %s3530_s2, %s2589_s15  ;;  %p2593_p3 = scmp.lt.u32.totalorder %s2589_s15, %s3530_s2 }
  0x2b   :  { %p2595_p4 = pnand %p2593_p3, %p2590_p2 }
  0x2d   :  { %2598 = shalt.err (!%p2595_p4)
}
  0x2e   :  { %s2599_s0 = scalar_lea.vmem %s50_s10, 512  ;;  %p2604_p6 = scmp.lt.s32.totalorder %s50_s10, %s50_s10 }
  0x2f   :  { %p2600_p5 = scmp.ne.s32.totalorder %s50_s10, %s2599_s0  ;;  %p2605_p7 = scmp.lt.s32.totalorder %s2599_s0, %s2599_s0 }
  0x31   :  { %p2606_p8 = por %p2605_p7, %p2604_p6 }
  0x33   :  { %p2607_p9 = pnand %p2606_p8, %p2600_p5 }
  0x35   :  { %2610 = shalt.err (!%p2607_p9)
}
  0x36   :  { %55 = dma.hbm_to_vmem [thread:$0]  %s3530_s2, 512, %s50_s10, [#allocation6], %s2735_s17, %s2735_s17, %s2736_s18  }
  0x37   :  { %s2611_s25 = scalar_lea.hbm %s3531_s3, 512 }
  0x38   :  { %p2612_p10 = scmp.ne.s32.totalorder %s3531_s3, %s2611_s25  ;;  %p2615_p11 = scmp.lt.u32.totalorder %s2611_s25, %s3531_s3 }
  0x3a   :  { %p2617_p12 = pnand %p2615_p11, %p2612_p10 }
  0x3c   :  { %2620 = shalt.err (!%p2617_p12)
}
  0x3d   :  { %s2621_s28 = scalar_lea.vmem %s2831_s12, 512  ;;  %p2626_p0 = scmp.lt.s32.totalorder %s2831_s12, %s2831_s12 }
  0x3e   :  { %p2622_p13 = scmp.ne.s32.totalorder %s2831_s12, %s2621_s28  ;;  %p2627_p1 = scmp.lt.s32.totalorder %s2621_s28, %s2621_s28 }
  0x40   :  { %p2628_p2 = por %p2627_p1, %p2626_p0 }
  0x42   :  { %p2629_p3 = pnand %p2628_p2, %p2622_p13 }
  0x44   :  { %2632 = shalt.err (!%p2629_p3)
}
  0x45   :  { %67 = dma.hbm_to_vmem [thread:$0]  %s3531_s3, 512, %s2831_s12, [#allocation9], %s2735_s17, %s2735_s17, %s2736_s18  }
  0x46   :  { %2721 = dma.done.wait [#allocation3], 1024  }
  0x47   :  { %2722 = vsyncadd [#allocation3], 4294966272 }
  0x48   :  { %2723 = dma.done.wait [#allocation6], 1536  }
  0x49   :  { %2724 = vsyncadd [#allocation6], 4294965760 }
  0x4a   :  { %2725 = dma.done.wait [#allocation9], 512  }
  0x4b   :  { %2726 = vsyncadd [#allocation9], 4294966784  ;;  %v2739_v0 = vmov 0.0|0.0   ;;  %vm2740_vm0 = vmmov 0   ;;  %v2741_v1 = vmov 0.0   ;;  %v86_v2 = vld [vmem:[#allocation8] sm:$0xff] }
  0x4c   :  { %2308 = vmatprep.subr.bf16.mxu1 %v2739_v0  ;;  %2302 = vmatprep.subr.bf16.mxu0 %v2739_v0  ;;  %v87_v3 = vld [vmem:[#allocation8 + $0x8] sm:$0xff]  ;;  %v82_v4 = vld [vmem:[#allocation7] sm:$0xff]  ;;  %v88_v7 = vld [vmem:[#allocation8 + $0x10] sm:$0xff]  ;;  %v2742_v14 = vmov 0   ;;  %s2743_s11 = smov 64   ;;  %s2744_s12 = smov 32  }
  0x4d   :  { %2145 = vmatprep.mubr.msk.f32.mxu1 %vm2740_vm0, %v2741_v1  ;;  %2134 = vmatprep.mubr.msk.f32.mxu0 %vm2740_vm0, %v2741_v1  ;;  %v2874_v5 = vpack.c.bf16 %v87_v3, %v86_v2  ;;  %v83_v6 = vld [vmem:[#allocation7 + $0x8] sm:$0xff]  ;;  %v89_v8 = vld [vmem:[#allocation8 + $0x18] sm:$0xff]  ;;  %v84_v10 = vld [vmem:[#allocation7 + $0x10] sm:$0xff]  ;;  %vm93_vm5 = vcmask 261120   ;;  %s2746_s16 = smov [#allocation10]   ;;  %s2747_s20 = smov [#allocation13]  }
  0x4e   :  { %v2876_v9 = vpack.c.bf16 %v83_v6, %v82_v4  ;;  %v85_v11 = vld [vmem:[#allocation7 + $0x18] sm:$0xff]  ;;  %v2879_v12 = vpack.c.bf16 %v89_v8, %v88_v7  ;;  %2414 = vset.pattern.permute.xlu0 %v2742_v14  ;;  %2415 = vset.pattern.permute.xlu1 %v2742_v14  ;;  %v92_v16 = vld [vmem:[#allocation2] sm:$0xff]  ;;  %v416_v59 = vld [vmem:[#allocation5 + $0x30] sm:$0xff]  ;;  %s1959_s19 = sshll.u32 %s2746_s16, 4  ;;  %s1984_s21 = sshll.u32 %s2747_s20, 4  ;;  %s1960_s19 = int_to_ptr.vmem [resolvable:$true] %s1959_s19  ;;  %s3472_s21 = int_to_ptr.vmem [resolvable:$true] %s1984_s21 }
  0x4f   :  { %2310 = vmatpush3.bf16.msra.mxu1 %v2874_v5  ;;  %v2883_v13 = vpack.c.bf16 %v85_v11, %v84_v10  ;;  %v193_v15 = vld [vmem:[#allocation5 + $0x38] sm:$0xff]  ;;  %v2909_v23 = vld [vmem:[%s3532_s4] sm:$0xff]  ;;  %v317_v63 = vld [vmem:[#allocation2 + $0x8] sm:$0xff]  ;;  %s2748_s0 = smov [#allocation14]  }
  0x50   :  { %2304 = vmatpush3.bf16.msra.mxu0 %v2876_v9  ;;  %2311 = vmatprep.subr.bf16.mxu1 %v2739_v0  ;;  %v2912_v24 = vsub.s32 8, %v2909_v23  ;;  %vm289_vm2 = vcmp.gt.s32.totalorder %v2909_v23, 0  ;;  %vm514_vm7 = vcmp.gt.s32.totalorder %v2909_v23, 1  ;;  %vm748_vm11 = vcmp.gt.s32.totalorder %v2909_v23, 2  ;;  %s1994_s30 = sshll.u32 %s2748_s0, 4  ;;  %s3476_s30 = int_to_ptr.vmem [resolvable:$true] %s1994_s30 }
  0x51   :  { %2305 = vmatprep.subr.bf16.mxu0 %v2739_v0  ;;  %v291_v40 = vsel %vm289_vm2, 1, %v2742_v14  ;;  %vm982_vm15 = vcmp.gt.s32.totalorder %v2909_v23, 3 }
  0x52   :  { %vm290_vm1 = vcmp.le.s32.totalorder %v2912_v24, 0  ;;  %vm515_vm6 = vcmp.le.s32.totalorder %v2912_v24, 1  ;;  %vm749_vm10 = vcmp.le.s32.totalorder %v2912_v24, 2  ;;  %vm983_vm14 = vcmp.le.s32.totalorder %v2912_v24, 3 }
  0x53   :  { %2313 = vmatpush3.bf16.msra.mxu1 %v2879_v12  ;;  %v298_v27 = vsel %vm290_vm1, 1, %v2742_v14 }
  0x54   :  { %2307 = vmatpush3.bf16.msra.mxu0 %v2883_v13  ;;  %2320 = vmatprep.subr.bf16.mxu1 %v2739_v0 }
  0x55   :  { %2314 = vmatprep.subr.bf16.mxu0 %v2739_v0 }
  0x56   :  { %2146 = vmatmul.mubr.f32.vlgmr.msra.gmra.mrb[0].mxu1 %v2741_v1 }
  0x57   :  { %2135 = vmatmul.mubr.f32.vlgmr.msra.gmra.mrb[0].mxu0 %v2741_v1  ;;  %2322 = vmatpush3.bf16.msra.mxu1 %v2874_v5 }
  0x58   :  { %2323 = vmatprep.subr.bf16.mxu1 %v2739_v0  ;;  %2316 = vmatpush3.bf16.msra.mxu0 %v2876_v9 }
  0x59   :  { %2167 = vmatprep.mubr.msk.f32.mxu1 %vm2740_vm0, %v2741_v1  ;;  %2317 = vmatprep.subr.bf16.mxu0 %v2739_v0 }
  0x5a   :  { %2156 = vmatprep.mubr.msk.f32.mxu0 %vm2740_vm0, %v2741_v1 }
  0x5b   :  { %2325 = vmatpush3.bf16.msra.mxu1 %v2879_v12 }
  0x5c   :  { %2319 = vmatpush3.bf16.msra.mxu0 %v2883_v13  ;;  %2332 = vmatprep.subr.bf16.mxu1 %v2739_v0 }
  0x5d   :  { %2326 = vmatprep.subr.bf16.mxu0 %v2739_v0 }
 0x129   :  { %v260_v17 = vpop.f32.mrb[0].mxu1 }
 0x12a   :  { %v264_v18 = vadd.f32 %v260_v17, %v193_v15  ;;  %v2147_v19 = vpop.f32.mrb[1].mxu1  ;;  %v163_v20 = vpop.f32.mrb[0].mxu0 }
 0x12b   :  { %v167_v21 = vadd.f32 %v163_v20, %v92_v16  ;;  %v2136_v22 = vpop.f32.mrb[1].mxu0 }
 0x12c   :  { %2416 = vtanh.f32 %v264_v18  ;;  %v2017_v28 = vmul.f32 -1.442695, %v264_v18 }
 0x12d   :  { %2418 = vtanh.f32 %v167_v21  ;;  %v2016_v29 = vmul.f32 -1.442695, %v167_v21 }
 0x12e   :  { %2420 = vpow2.f32 %v2017_v28 }
 0x12f   :  { %2422 = vpow2.f32 %v2016_v29 }
 0x136   :  { %v2417_v25 = vpop.eup %2416 }
 0x137   :  { %274 = vrot.lane.b32.xlu0 %v2417_v25, %s2743_s11  ;;  %v2419_v26 = vpop.eup %2418  ;;  %v523_v25 = vsel %vm515_vm6, 1, %v2742_v14 }
 0x138   :  { %v2421_v30 = vpop.eup %2420 }
 0x139   :  { %v268_v31 = vadd.f32 1.0, %v2421_v30  ;;  %v2423_v32 = vpop.eup %2422 }
 0x13a   :  { %v171_v33 = vadd.f32 1.0, %v2423_v32 }
 0x13b   :  { %177 = vrot.lane.b32.xlu0 %v2419_v26, %s2743_s11  ;;  %2424 = vrcp.f32 %v268_v31 }
 0x13c   :  { %2426 = vrcp.f32 %v171_v33 }
 0x13f   :  { %300 = vperm.xlu0 %2414, %v298_v27   ;;  %v516_v27 = vsel %vm514_vm7, 1, %v2742_v14 }
 0x145   :  { %v2425_v34 = vpop.eup %2424 }
 0x146   :  { %v2427_v37 = vpop.eup %2426  ;;  %v272_v41 = vmul.f32 0.0, %v2425_v34 }
 0x147   :  { %v175_v44 = vmul.f32 0.0, %v2427_v37 }
 0x1a9   :  { %v275_v35 = vpop.permute.xlu0 %274 }
 0x1aa   :  { %v277_v36 = vmul.f32 %v2425_v34, %v275_v35 }
 0x1ac   :  { %279 = vrot.lane.b32.xlu1 %v277_v36, %s2744_s12 }
 0x1ad   :  { %v178_v38 = vpop.permute.xlu0 %177 }
 0x1ae   :  { %v180_v39 = vmul.f32 %v2427_v37, %v178_v38 }
 0x1b0   :  { %182 = vrot.lane.b32.xlu1 %v180_v39, %s2744_s12 }
 0x1b4   :  { %293 = vperm.xlu1 %2415, %v291_v40  }
 0x1be   :  { %v2932_v50 = vpop.permute.xlu0 %300 }
 0x1bf   :  { %vm302_vm3 = vcmp.eq.s32.totalorder %v2932_v50, 1 }
 0x21e   :  { %v280_v42 = vpop.permute.xlu1 %279 }
 0x21f   :  { %v2922_v43 = vadd.f32 %v280_v42, %v272_v41 }
 0x221   :  { %2428 = vtanh.f32 %v2922_v43  ;;  %v2975_v28 = vsel %vm302_vm3, %v2922_v43, 0.0 }
 0x222   :  { %v183_v45 = vpop.permute.xlu1 %182 }
 0x223   :  { %v2925_v46 = vadd.f32 %v183_v45, %v175_v44 }
 0x225   :  { %2430 = vtanh.f32 %v2925_v46 }
 0x22b   :  { %v2429_v47 = vpop.eup %2428 }
 0x22c   :  { %285 = vrot.lane.b32.xlu1 %v2429_v47, %s2743_s11 }
 0x22f   :  { %v2431_v48 = vpop.eup %2430 }
 0x230   :  { %188 = vrot.lane.b32.xlu0 %v2431_v48, %s2743_s11  ;;  %v647_v48 = vld [vmem:[#allocation5 + $0x28] sm:$0xff] }
 0x233   :  { %v2930_v49 = vpop.permute.xlu1 %293 }
 0x234   :  { %vm295_vm4 = vcmp.eq.s32.totalorder %v2930_v49, 1 }
 0x235   :  { %v2983_v32 = vsel %vm295_vm4, %v2925_v46, 0.0 }
 0x29e   :  { %v286_v51 = vpop.permute.xlu1 %285 }
 0x29f   :  { %v288_v52 = vmul.f32 %v2425_v34, %v286_v51 }
 0x2a1   :  { %v2937_v53 = vsel %vm302_vm3, %v288_v52, 0.0  ;;  %v545_v52 = vld [vmem:[#allocation2 + $0x10] sm:$0xff]  ;;  %vm1217_vm3 = vcmp.le.s32.totalorder %v2912_v24, 4 }
 0x2a2   :  { %311 = vrot.lane.b32.xlu1 %v2937_v53, %s2744_s12  ;;  %v189_v54 = vpop.permute.xlu0 %188 }
 0x2a3   :  { %v191_v55 = vmul.f32 %v2427_v37, %v189_v54 }
 0x2a5   :  { %v2944_v56 = vsel %vm295_vm4, %v191_v55, 0.0  ;;  %vm1216_vm4 = vcmp.gt.s32.totalorder %v2909_v23, 4 }
 0x2a6   :  { %306 = vrot.lane.b32.xlu0 %v2944_v56, %s2744_s12 }
 0x314   :  { %v312_v57 = vpop.permute.xlu1 %311 }
 0x315   :  { %315 = vst.msk [vmem:[#allocation11 + $0x38] sm:$0xff] %vm93_vm5, %v312_v57  ;;  %2168 = vmatmul.mubr.msk.f32.vlgmr.msra.gmra.mrb[2].mxu1 %vm93_vm5, %v312_v57 }
 0x316   :  { %2334 = vmatpush3.bf16.msra.mxu1 %v2874_v5  ;;  %2189 = vmatprep.mubr.msk.f32.mxu1 %vm2740_vm0, %v2741_v1 }
 0x317   :  { %2335 = vmatprep.subr.bf16.mxu1 %v2739_v0 }
 0x318   :  { %v307_v58 = vpop.permute.xlu0 %306 }
 0x319   :  { %309 = vst.msk [vmem:[#allocation10] sm:$0xff] %vm93_vm5, %v307_v58  ;;  %2157 = vmatmul.mubr.msk.f32.vlgmr.msra.gmra.mrb[2].mxu0 %vm93_vm5, %v307_v58 }
 0x31a   :  { %2328 = vmatpush3.bf16.msra.mxu0 %v2876_v9  ;;  %2337 = vmatpush3.bf16.msra.mxu1 %v2879_v12 }
 0x31b   :  { %2329 = vmatprep.subr.bf16.mxu0 %v2739_v0  ;;  %2178 = vmatprep.mubr.msk.f32.mxu0 %vm2740_vm0, %v2741_v1 }
 0x31c   :  { %2344 = vmatprep.subr.bf16.mxu1 %v2739_v0 }
 0x31e   :  { %2331 = vmatpush3.bf16.msra.mxu0 %v2883_v13 }
 0x31f   :  { %2338 = vmatprep.subr.bf16.mxu0 %v2739_v0 }
 0x3e8   :  { %v485_v60 = vpop.f32.mrb[2].mxu1 }
 0x3e9   :  { %v489_v61 = vadd.f32 %v485_v60, %v416_v59  ;;  %v2169_v62 = vpop.f32.mrb[3].mxu1 }
 0x3eb   :  { %2432 = vtanh.f32 %v489_v61  ;;  %v2021_v8 = vmul.f32 -1.442695, %v489_v61 }
 0x3ec   :  { %v386_v2 = vpop.f32.mrb[2].mxu0 }
 0x3ed   :  { %v390_v3 = vadd.f32 %v386_v2, %v317_v63  ;;  %v2158_v4 = vpop.f32.mrb[3].mxu0 }
 0x3ef   :  { %2434 = vtanh.f32 %v390_v3  ;;  %v2019_v10 = vmul.f32 -1.442695, %v390_v3 }
 0x3f0   :  { %2436 = vpow2.f32 %v2021_v8  ;;  %v757_v8 = vsel %vm749_vm10, 1, %v2742_v14  ;;  %vm1451_vm10 = vcmp.le.s32.totalorder %v2912_v24, 5 }
 0x3f1   :  { %2438 = vpow2.f32 %v2019_v10 }
 0x3f5   :  { %v2433_v6 = vpop.eup %2432 }
 0x3f6   :  { %499 = vrot.lane.b32.xlu1 %v2433_v6, %s2743_s11 }
 0x3f9   :  { %v2435_v7 = vpop.eup %2434 }
 0x3fa   :  { %400 = vrot.lane.b32.xlu0 %v2435_v7, %s2743_s11  ;;  %v2437_v11 = vpop.eup %2436 }
 0x3fb   :  { %v493_v15 = vadd.f32 1.0, %v2437_v11  ;;  %v2439_v16 = vpop.eup %2438  ;;  %v750_v11 = vsel %vm748_vm11, 1, %v2742_v14  ;;  %vm1450_vm11 = vcmp.gt.s32.totalorder %v2909_v23, 5 }
 0x3fc   :  { %v394_v17 = vadd.f32 1.0, %v2439_v16 }
 0x3fd   :  { %2440 = vrcp.f32 %v493_v15 }
 0x3fe   :  { %2442 = vrcp.f32 %v394_v17 }
 0x407   :  { %v2441_v18 = vpop.eup %2440 }
 0x408   :  { %v2443_v21 = vpop.eup %2442  ;;  %v497_v29 = vmul.f32 %v2441_v18, %v2975_v28 }
 0x409   :  { %v398_v33 = vmul.f32 %v2443_v21, %v2983_v32 }
 0x468   :  { %v500_v19 = vpop.permute.xlu1 %499 }
 0x469   :  { %v502_v20 = vmul.f32 %v2441_v18, %v500_v19 }
 0x46b   :  { %504 = vrot.lane.b32.xlu1 %v502_v20, %s2744_s12 }
 0x46c   :  { %v401_v22 = vpop.permute.xlu0 %400 }
 0x46d   :  { %v403_v26 = vmul.f32 %v2443_v21, %v401_v22 }
 0x46f   :  { %525 = vperm.xlu1 %2415, %v523_v25   ;;  %405 = vrot.lane.b32.xlu0 %v403_v26, %s2744_s12 }
 0x473   :  { %518 = vperm.xlu0 %2414, %v516_v27  }
 0x4dd   :  { %v505_v30 = vpop.permute.xlu1 %504 }
 0x4de   :  { %v2978_v31 = vadd.f32 %v505_v30, %v497_v29 }
 0x4e0   :  { %2444 = vtanh.f32 %v2978_v31 }
 0x4e1   :  { %v406_v34 = vpop.permute.xlu0 %405 }
 0x4e2   :  { %v2987_v35 = vadd.f32 %v406_v34, %v398_v33 }
 0x4e4   :  { %2446 = vtanh.f32 %v2987_v35 }
 0x4ea   :  { %v2445_v36 = vpop.eup %2444 }
 0x4eb   :  { %510 = vrot.lane.b32.xlu1 %v2445_v36, %s2743_s11 }
 0x4ee   :  { %v2447_v37 = vpop.eup %2446  ;;  %v2992_v38 = vpop.permute.xlu1 %525 }
 0x4ef   :  { %411 = vrot.lane.b32.xlu0 %v2447_v37, %s2743_s11  ;;  %vm527_vm8 = vcmp.eq.s32.totalorder %v2992_v38, 1  ;;  %v881_v37 = vld [vmem:[#allocation5 + $0x20] sm:$0xff] }
 0x4f0   :  { %v3044_v15 = vsel %vm527_vm8, %v2978_v31, %v2975_v28 }
 0x4f2   :  { %v2994_v39 = vpop.permute.xlu0 %518 }
 0x4f3   :  { %vm520_vm9 = vcmp.eq.s32.totalorder %v2994_v39, 1 }
 0x4f4   :  { %v3053_v19 = vsel %vm520_vm9, %v2987_v35, %v2983_v32 }
 0x55d   :  { %v511_v40 = vpop.permute.xlu1 %510 }
 0x55e   :  { %v2996_v41 = vmul.f32 %v2441_v18, %v511_v40 }
 0x560   :  { %v3003_v42 = vsel %vm527_vm8, %v2996_v41, %v2937_v53 }
 0x561   :  { %649 = vrot.lane.b32.xlu1 %v3003_v42, %s2744_s12  ;;  %v412_v43 = vpop.permute.xlu0 %411 }
 0x562   :  { %v3007_v44 = vmul.f32 %v2443_v21, %v412_v43 }
 0x564   :  { %v3014_v45 = vsel %vm520_vm9, %v3007_v44, %v2944_v56 }
 0x565   :  { %547 = vrot.lane.b32.xlu0 %v3014_v45, %s2744_s12 }
 0x5d3   :  { %v650_v46 = vpop.permute.xlu1 %649 }
 0x5d4   :  { %2190 = vmatmul.mubr.msk.f32.vlgmr.msra.gmra.mrb[4].mxu1 %vm93_vm5, %v650_v46 }
 0x5d5   :  { %2346 = vmatpush3.bf16.msra.mxu1 %v2874_v5  ;;  %2211 = vmatprep.mubr.msk.f32.mxu1 %vm2740_vm0, %v2741_v1 }
 0x5d6   :  { %2347 = vmatprep.subr.bf16.mxu1 %v2739_v0 }
 0x5d7   :  { %v548_v47 = vpop.permute.xlu0 %547 }
 0x5d8   :  { %2179 = vmatmul.mubr.msk.f32.vlgmr.msra.gmra.mrb[4].mxu0 %vm93_vm5, %v548_v47 }
 0x5d9   :  { %2340 = vmatpush3.bf16.msra.mxu0 %v2876_v9  ;;  %2349 = vmatpush3.bf16.msra.mxu1 %v2879_v12 }
 0x5da   :  { %2341 = vmatprep.subr.bf16.mxu0 %v2739_v0  ;;  %2200 = vmatprep.mubr.msk.f32.mxu0 %vm2740_vm0, %v2741_v1 }
 0x5db   :  { %2356 = vmatprep.subr.bf16.mxu1 %v2739_v0 }
 0x5dd   :  { %2343 = vmatpush3.bf16.msra.mxu0 %v2883_v13 }
 0x5de   :  { %2350 = vmatprep.subr.bf16.mxu0 %v2739_v0 }
 0x6a7   :  { %v719_v49 = vpop.f32.mrb[4].mxu1 }
 0x6a8   :  { %v723_v50 = vadd.f32 %v719_v49, %v647_v48  ;;  %v2191_v51 = vpop.f32.mrb[5].mxu1 }
 0x6aa   :  { %2448 = vtanh.f32 %v723_v50  ;;  %v2025_v58 = vmul.f32 -1.442695, %v723_v50 }
 0x6ab   :  { %v617_v53 = vpop.f32.mrb[4].mxu0 }
 0x6ac   :  { %v621_v54 = vadd.f32 %v617_v53, %v545_v52  ;;  %v2180_v55 = vpop.f32.mrb[5].mxu0 }
 0x6ae   :  { %2450 = vtanh.f32 %v621_v54  ;;  %v2023_v59 = vmul.f32 -1.442695, %v621_v54 }
 0x6af   :  { %2452 = vpow2.f32 %v2025_v58 }
 0x6b0   :  { %2454 = vpow2.f32 %v2023_v59 }
 0x6b4   :  { %v2449_v56 = vpop.eup %2448 }
 0x6b5   :  { %733 = vrot.lane.b32.xlu1 %v2449_v56, %s2743_s11 }
 0x6b8   :  { %v2451_v57 = vpop.eup %2450 }
 0x6b9   :  { %631 = vrot.lane.b32.xlu0 %v2451_v57, %s2743_s11  ;;  %v2453_v60 = vpop.eup %2452 }
 0x6ba   :  { %v727_v61 = vadd.f32 1.0, %v2453_v60  ;;  %v2455_v62 = vpop.eup %2454 }
 0x6bb   :  { %v625_v63 = vadd.f32 1.0, %v2455_v62  ;;  %v991_v62 = vsel %vm983_vm14, 1, %v2742_v14 }
 0x6bc   :  { %2456 = vrcp.f32 %v727_v61 }
 0x6bd   :  { %2458 = vrcp.f32 %v625_v63 }
 0x6c6   :  { %v2457_v2 = vpop.eup %2456 }
 0x6c7   :  { %v2459_v6 = vpop.eup %2458  ;;  %v731_v16 = vmul.f32 %v2457_v2, %v3044_v15 }
 0x6c8   :  { %v629_v20 = vmul.f32 %v2459_v6, %v3053_v19 }
 0x727   :  { %v734_v3 = vpop.permute.xlu1 %733 }
 0x728   :  { %v736_v4 = vmul.f32 %v2457_v2, %v734_v3 }
 0x72a   :  { %738 = vrot.lane.b32.xlu1 %v736_v4, %s2744_s12 }
 0x72b   :  { %v632_v7 = vpop.permute.xlu0 %631 }
 0x72c   :  { %v634_v10 = vmul.f32 %v2459_v6, %v632_v7 }
 0x72e   :  { %759 = vperm.xlu1 %2415, %v757_v8   ;;  %636 = vrot.lane.b32.xlu0 %v634_v10, %s2744_s12 }
 0x732   :  { %752 = vperm.xlu0 %2414, %v750_v11  }
 0x79c   :  { %v739_v17 = vpop.permute.xlu1 %738 }
 0x79d   :  { %v3047_v18 = vadd.f32 %v739_v17, %v731_v16 }
 0x79f   :  { %2460 = vtanh.f32 %v3047_v18 }
 0x7a0   :  { %v637_v21 = vpop.permute.xlu0 %636 }
 0x7a1   :  { %v3057_v22 = vadd.f32 %v637_v21, %v629_v20 }
 0x7a3   :  { %2462 = vtanh.f32 %v3057_v22 }
 0x7a9   :  { %v2461_v25 = vpop.eup %2460 }
 0x7aa   :  { %744 = vrot.lane.b32.xlu1 %v2461_v25, %s2743_s11 }
 0x7ad   :  { %v2463_v26 = vpop.eup %2462  ;;  %v3062_v27 = vpop.permute.xlu1 %759 }
 0x7ae   :  { %642 = vrot.lane.b32.xlu0 %v2463_v26, %s2743_s11  ;;  %vm761_vm12 = vcmp.eq.s32.totalorder %v3062_v27, 1 }
 0x7af   :  { %v3114_v3 = vsel %vm761_vm12, %v3047_v18, %v3044_v15 }
 0x7b1   :  { %v3064_v28 = vpop.permute.xlu0 %752 }
 0x7b2   :  { %vm754_vm13 = vcmp.eq.s32.totalorder %v3064_v28, 1 }
 0x7b3   :  { %v3123_v8 = vsel %vm754_vm13, %v3057_v22, %v3053_v19 }
 0x81c   :  { %v745_v29 = vpop.permute.xlu1 %744 }
 0x81d   :  { %v3066_v30 = vmul.f32 %v2457_v2, %v745_v29  ;;  %v984_v2 = vsel %vm982_vm15, 1, %v2742_v14 }
 0x81f   :  { %v3073_v31 = vsel %vm761_vm12, %v3066_v30, %v3003_v42 }
 0x820   :  { %883 = vrot.lane.b32.xlu1 %v3073_v31, %s2744_s12  ;;  %v643_v32 = vpop.permute.xlu0 %642 }
 0x821   :  { %v3077_v33 = vmul.f32 %v2459_v6, %v643_v32 }
 0x823   :  { %v3084_v34 = vsel %vm754_vm13, %v3077_v33, %v3014_v45  ;;  %v779_v45 = vld [vmem:[#allocation2 + $0x18] sm:$0xff]  ;;  %v764_v27 = vsel %vm754_vm13, %v3077_v33, 0.0 }
 0x824   :  { %781 = vrot.lane.b32.xlu0 %v3084_v34, %s2744_s12 }
 0x892   :  { %v884_v35 = vpop.permute.xlu1 %883 }
 0x893   :  { %2212 = vmatmul.mubr.msk.f32.vlgmr.msra.gmra.mrb[6].mxu1 %vm93_vm5, %v884_v35 }
 0x894   :  { %2358 = vmatpush3.bf16.msra.mxu1 %v2874_v5  ;;  %2233 = vmatprep.mubr.msk.f32.mxu1 %vm2740_vm0, %v2741_v1 }
 0x895   :  { %2359 = vmatprep.subr.bf16.mxu1 %v2739_v0 }
 0x896   :  { %v782_v36 = vpop.permute.xlu0 %781 }
 0x897   :  { %2201 = vmatmul.mubr.msk.f32.vlgmr.msra.gmra.mrb[6].mxu0 %vm93_vm5, %v782_v36 }
 0x898   :  { %2352 = vmatpush3.bf16.msra.mxu0 %v2876_v9  ;;  %2361 = vmatpush3.bf16.msra.mxu1 %v2879_v12 }
 0x899   :  { %2353 = vmatprep.subr.bf16.mxu0 %v2739_v0  ;;  %2222 = vmatprep.mubr.msk.f32.mxu0 %vm2740_vm0, %v2741_v1 }
 0x89a   :  { %2368 = vmatprep.subr.bf16.mxu1 %v2739_v0 }
 0x89c   :  { %2355 = vmatpush3.bf16.msra.mxu0 %v2883_v13 }
 0x89d   :  { %2362 = vmatprep.subr.bf16.mxu0 %v2739_v0 }
 0x966   :  { %v953_v40 = vpop.f32.mrb[6].mxu1 }
 0x967   :  { %v957_v42 = vadd.f32 %v953_v40, %v881_v37  ;;  %v2213_v43 = vpop.f32.mrb[7].mxu1  ;;  %v1013_v40 = vld [vmem:[#allocation2 + $0x20] sm:$0xff] }
 0x969   :  { %2464 = vtanh.f32 %v957_v42  ;;  %v2029_v51 = vmul.f32 -1.442695, %v957_v42 }
 0x96a   :  { %v851_v46 = vpop.f32.mrb[6].mxu0 }
 0x96b   :  { %v855_v47 = vadd.f32 %v851_v46, %v779_v45  ;;  %v2202_v48 = vpop.f32.mrb[7].mxu0 }
 0x96d   :  { %2466 = vtanh.f32 %v855_v47  ;;  %v2027_v52 = vmul.f32 -1.442695, %v855_v47 }
 0x96e   :  { %2468 = vpow2.f32 %v2029_v51 }
 0x96f   :  { %2470 = vpow2.f32 %v2027_v52 }
 0x973   :  { %v2465_v49 = vpop.eup %2464 }
 0x974   :  { %967 = vrot.lane.b32.xlu1 %v2465_v49, %s2743_s11 }
 0x977   :  { %v2467_v50 = vpop.eup %2466 }
 0x978   :  { %865 = vrot.lane.b32.xlu0 %v2467_v50, %s2743_s11  ;;  %v2469_v53 = vpop.eup %2468 }
 0x979   :  { %v961_v54 = vadd.f32 1.0, %v2469_v53  ;;  %v2471_v55 = vpop.eup %2470 }
 0x97a   :  { %v859_v56 = vadd.f32 1.0, %v2471_v55 }
 0x97b   :  { %2472 = vrcp.f32 %v961_v54 }
 0x97c   :  { %2474 = vrcp.f32 %v859_v56 }
 0x985   :  { %v2473_v57 = vpop.eup %2472 }
 0x986   :  { %v2475_v60 = vpop.eup %2474  ;;  %v965_v4 = vmul.f32 %v2473_v57, %v3114_v3 }
 0x987   :  { %v863_v10 = vmul.f32 %v2475_v60, %v3123_v8 }
 0x9e6   :  { %v968_v58 = vpop.permute.xlu1 %967 }
 0x9e7   :  { %v970_v59 = vmul.f32 %v2473_v57, %v968_v58 }
 0x9e9   :  { %972 = vrot.lane.b32.xlu1 %v970_v59, %s2744_s12  ;;  %v1225_v59 = vsel %vm1217_vm3, 1, %v2742_v14  ;;  %vm1684_vm3 = vcmp.gt.s32.totalorder %v2909_v23, 6 }
 0x9ea   :  { %v866_v61 = vpop.permute.xlu0 %865 }
 0x9eb   :  { %v868_v63 = vmul.f32 %v2475_v60, %v866_v61  ;;  %v1218_v61 = vsel %vm1216_vm4, 1, %v2742_v14 }
 0x9ed   :  { %993 = vperm.xlu1 %2415, %v991_v62   ;;  %870 = vrot.lane.b32.xlu0 %v868_v63, %s2744_s12 }
 0x9f1   :  { %986 = vperm.xlu0 %2414, %v984_v2  }
 0xa5b   :  { %v973_v6 = vpop.permute.xlu1 %972 }
 0xa5c   :  { %v3117_v7 = vadd.f32 %v973_v6, %v965_v4 }
 0xa5e   :  { %2476 = vtanh.f32 %v3117_v7 }
 0xa5f   :  { %v871_v11 = vpop.permute.xlu0 %870 }
 0xa60   :  { %v3127_v16 = vadd.f32 %v871_v11, %v863_v10 }
 0xa62   :  { %2478 = vtanh.f32 %v3127_v16 }
 0xa68   :  { %v2477_v15 = vpop.eup %2476 }
 0xa69   :  { %978 = vrot.lane.b32.xlu1 %v2477_v15, %s2743_s11 }
 0xa6c   :  { %v2479_v17 = vpop.eup %2478  ;;  %v3132_v18 = vpop.permute.xlu1 %993 }
 0xa6d   :  { %876 = vrot.lane.b32.xlu0 %v2479_v17, %s2743_s11  ;;  %vm995_vm1 = vcmp.eq.s32.totalorder %v3132_v18, 1 }
 0xa6e   :  { %v3184_v62 = vsel %vm995_vm1, %v3117_v7, %v3114_v3 }
 0xa70   :  { %v3134_v20 = vpop.permute.xlu0 %986 }
 0xa71   :  { %vm988_vm2 = vcmp.eq.s32.totalorder %v3134_v20, 1 }
 0xa72   :  { %v3193_v6 = vsel %vm988_vm2, %v3127_v16, %v3123_v8 }
 0xadb   :  { %v979_v19 = vpop.permute.xlu1 %978 }
 0xadc   :  { %v3136_v21 = vmul.f32 %v2473_v57, %v979_v19 }
 0xade   :  { %v3143_v22 = vsel %vm995_vm1, %v3136_v21, %v3073_v31 }
 0xadf   :  { %1117 = vrot.lane.b32.xlu1 %v3143_v22, %s2744_s12  ;;  %v877_v25 = vpop.permute.xlu0 %876 }
 0xae0   :  { %v3147_v26 = vmul.f32 %v2475_v60, %v877_v25 }
 0xae2   :  { %v3154_v29 = vsel %vm988_vm2, %v3147_v26, %v3084_v34  ;;  %v1115_v34 = vld [vmem:[#allocation5 + $0x18] sm:$0xff]  ;;  %v998_v33 = vsel %vm988_vm2, %v3147_v26, 0.0 }
 0xae3   :  { %1015 = vrot.lane.b32.xlu0 %v3154_v29, %s2744_s12 }
 0xb51   :  { %v1118_v32 = vpop.permute.xlu1 %1117 }
 0xb52   :  { %2234 = vmatmul.mubr.msk.f32.vlgmr.msra.gmra.mrb[8].mxu1 %vm93_vm5, %v1118_v32 }
 0xb53   :  { %2370 = vmatpush3.bf16.msra.mxu1 %v2874_v5  ;;  %2255 = vmatprep.mubr.msk.f32.mxu1 %vm2740_vm0, %v2741_v1 }
 0xb54   :  { %2371 = vmatprep.subr.bf16.mxu1 %v2739_v0 }
 0xb55   :  { %v1016_v31 = vpop.permute.xlu0 %1015 }
 0xb56   :  { %2223 = vmatmul.mubr.msk.f32.vlgmr.msra.gmra.mrb[8].mxu0 %vm93_vm5, %v1016_v31 }
 0xb57   :  { %2364 = vmatpush3.bf16.msra.mxu0 %v2876_v9  ;;  %2373 = vmatpush3.bf16.msra.mxu1 %v2879_v12 }
 0xb58   :  { %2365 = vmatprep.subr.bf16.mxu0 %v2739_v0  ;;  %2244 = vmatprep.mubr.msk.f32.mxu0 %vm2740_vm0, %v2741_v1 }
 0xb59   :  { %2380 = vmatprep.subr.bf16.mxu1 %v2739_v0 }
 0xb5b   :  { %2367 = vmatpush3.bf16.msra.mxu0 %v2883_v13 }
 0xb5c   :  { %2374 = vmatprep.subr.bf16.mxu0 %v2739_v0 }
 0xc25   :  { %v1187_v35 = vpop.f32.mrb[8].mxu1 }
 0xc26   :  { %v1191_v36 = vadd.f32 %v1187_v35, %v1115_v34  ;;  %v2235_v37 = vpop.f32.mrb[9].mxu1 }
 0xc28   :  { %2480 = vtanh.f32 %v1191_v36  ;;  %v2033_v48 = vmul.f32 -1.442695, %v1191_v36 }
 0xc29   :  { %v1085_v42 = vpop.f32.mrb[8].mxu0 }
 0xc2a   :  { %v1089_v43 = vadd.f32 %v1085_v42, %v1013_v40  ;;  %v2224_v45 = vpop.f32.mrb[9].mxu0  ;;  %v1247_v42 = vld [vmem:[#allocation2 + $0x28] sm:$0xff] }
 0xc2c   :  { %2482 = vtanh.f32 %v1089_v43  ;;  %v2031_v49 = vmul.f32 -1.442695, %v1089_v43 }
 0xc2d   :  { %2484 = vpow2.f32 %v2033_v48 }
 0xc2e   :  { %2486 = vpow2.f32 %v2031_v49 }
 0xc32   :  { %v2481_v46 = vpop.eup %2480 }
 0xc33   :  { %1201 = vrot.lane.b32.xlu1 %v2481_v46, %s2743_s11 }
 0xc36   :  { %v2483_v47 = vpop.eup %2482 }
 0xc37   :  { %1099 = vrot.lane.b32.xlu0 %v2483_v47, %s2743_s11  ;;  %v2485_v50 = vpop.eup %2484 }
 0xc38   :  { %v1195_v51 = vadd.f32 1.0, %v2485_v50  ;;  %v2487_v52 = vpop.eup %2486 }
 0xc39   :  { %v1093_v53 = vadd.f32 1.0, %v2487_v52 }
 0xc3a   :  { %2488 = vrcp.f32 %v1195_v51 }
 0xc3b   :  { %2490 = vrcp.f32 %v1093_v53 }
 0xc44   :  { %v2489_v54 = vpop.eup %2488 }
 0xc45   :  { %v2491_v57 = vpop.eup %2490  ;;  %v1199_v63 = vmul.f32 %v2489_v54, %v3184_v62 }
 0xc46   :  { %v1097_v10 = vmul.f32 %v2491_v57, %v3193_v6 }
 0xca5   :  { %v1202_v55 = vpop.permute.xlu1 %1201 }
 0xca6   :  { %v1204_v56 = vmul.f32 %v2489_v54, %v1202_v55 }
 0xca8   :  { %1206 = vrot.lane.b32.xlu1 %v1204_v56, %s2744_s12 }
 0xca9   :  { %v1100_v58 = vpop.permute.xlu0 %1099 }
 0xcaa   :  { %v1102_v60 = vmul.f32 %v2491_v57, %v1100_v58 }
 0xcac   :  { %1227 = vperm.xlu1 %2415, %v1225_v59   ;;  %1104 = vrot.lane.b32.xlu0 %v1102_v60, %s2744_s12  ;;  %v1459_v60 = vsel %vm1451_vm10, 1, %v2742_v14 }
 0xcb0   :  { %1220 = vperm.xlu0 %2414, %v1218_v61  }
 0xd1a   :  { %v1207_v2 = vpop.permute.xlu1 %1206 }
 0xd1b   :  { %v3187_v4 = vadd.f32 %v1207_v2, %v1199_v63  ;;  %v1452_v63 = vsel %vm1450_vm11, 1, %v2742_v14  ;;  %vm1918_vm11 = vcmp.le.s32.totalorder %v2912_v24, 7 }
 0xd1d   :  { %2492 = vtanh.f32 %v3187_v4 }
 0xd1e   :  { %v1105_v11 = vpop.permute.xlu0 %1104 }
 0xd1f   :  { %v3197_v15 = vadd.f32 %v1105_v11, %v1097_v10 }
 0xd21   :  { %2494 = vtanh.f32 %v3197_v15 }
 0xd27   :  { %v2493_v3 = vpop.eup %2492 }
 0xd28   :  { %1212 = vrot.lane.b32.xlu1 %v2493_v3, %s2743_s11 }
 0xd2b   :  { %v2495_v7 = vpop.eup %2494  ;;  %v3202_v17 = vpop.permute.xlu1 %1227 }
 0xd2c   :  { %1110 = vrot.lane.b32.xlu0 %v2495_v7, %s2743_s11  ;;  %vm1229_vm6 = vcmp.eq.s32.totalorder %v3202_v17, 1 }
 0xd2d   :  { %v3254_v2 = vsel %vm1229_vm6, %v3187_v4, %v3184_v62 }
 0xd2f   :  { %v3204_v19 = vpop.permute.xlu0 %1220 }
 0xd30   :  { %vm1222_vm7 = vcmp.eq.s32.totalorder %v3204_v19, 1 }
 0xd31   :  { %v3263_v7 = vsel %vm1222_vm7, %v3197_v15, %v3193_v6 }
 0xd9a   :  { %v1213_v8 = vpop.permute.xlu1 %1212 }
 0xd9b   :  { %v3206_v16 = vmul.f32 %v2489_v54, %v1213_v8 }
 0xd9d   :  { %v3213_v25 = vsel %vm1229_vm6, %v3206_v16, %v3143_v22 }
 0xd9e   :  { %1351 = vrot.lane.b32.xlu1 %v3213_v25, %s2744_s12  ;;  %v1111_v32 = vpop.permute.xlu0 %1110 }
 0xd9f   :  { %v3217_v31 = vmul.f32 %v2491_v57, %v1111_v32 }
 0xda1   :  { %v3224_v34 = vsel %vm1222_vm7, %v3217_v31, %v3154_v29  ;;  %v1349_v29 = vld [vmem:[#allocation5 + $0x10] sm:$0xff]  ;;  %v1232_v18 = vsel %vm1222_vm7, %v3217_v31, 0.0 }
 0xda2   :  { %1249 = vrot.lane.b32.xlu0 %v3224_v34, %s2744_s12 }
 0xe10   :  { %v1352_v35 = vpop.permute.xlu1 %1351 }
 0xe11   :  { %2256 = vmatmul.mubr.msk.f32.vlgmr.msra.gmra.mrb[10].mxu1 %vm93_vm5, %v1352_v35 }
 0xe12   :  { %2382 = vmatpush3.bf16.msra.mxu1 %v2874_v5  ;;  %2277 = vmatprep.mubr.msk.f32.mxu1 %vm2740_vm0, %v2741_v1 }
 0xe13   :  { %2383 = vmatprep.subr.bf16.mxu1 %v2739_v0 }
 0xe14   :  { %v1250_v22 = vpop.permute.xlu0 %1249 }
 0xe15   :  { %2245 = vmatmul.mubr.msk.f32.vlgmr.msra.gmra.mrb[10].mxu0 %vm93_vm5, %v1250_v22 }
 0xe16   :  { %2376 = vmatpush3.bf16.msra.mxu0 %v2876_v9  ;;  %2385 = vmatpush3.bf16.msra.mxu1 %v2879_v12 }
 0xe17   :  { %2377 = vmatprep.subr.bf16.mxu0 %v2739_v0  ;;  %2266 = vmatprep.mubr.msk.f32.mxu0 %vm2740_vm0, %v2741_v1 }
 0xe18   :  { %2392 = vmatprep.subr.bf16.mxu1 %v2739_v0 }
 0xe1a   :  { %2379 = vmatpush3.bf16.msra.mxu0 %v2883_v13 }
 0xe1b   :  { %2386 = vmatprep.subr.bf16.mxu0 %v2739_v0 }
 0xee4   :  { %v1421_v36 = vpop.f32.mrb[10].mxu1 }
 0xee5   :  { %v1425_v37 = vadd.f32 %v1421_v36, %v1349_v29  ;;  %v2257_v40 = vpop.f32.mrb[11].mxu1 }
 0xee7   :  { %2496 = vtanh.f32 %v1425_v37  ;;  %v2037_v49 = vmul.f32 -1.442695, %v1425_v37 }
 0xee8   :  { %v1319_v43 = vpop.f32.mrb[10].mxu0 }
 0xee9   :  { %v1323_v45 = vadd.f32 %v1319_v43, %v1247_v42  ;;  %v2246_v46 = vpop.f32.mrb[11].mxu0 }
 0xeeb   :  { %2498 = vtanh.f32 %v1323_v45  ;;  %v2035_v50 = vmul.f32 -1.442695, %v1323_v45 }
 0xeec   :  { %2500 = vpow2.f32 %v2037_v49 }
 0xeed   :  { %2502 = vpow2.f32 %v2035_v50 }
 0xef1   :  { %v2497_v47 = vpop.eup %2496 }
 0xef2   :  { %1435 = vrot.lane.b32.xlu1 %v2497_v47, %s2743_s11  ;;  %v1481_v47 = vld [vmem:[#allocation2 + $0x30] sm:$0xff] }
 0xef5   :  { %v2499_v48 = vpop.eup %2498 }
 0xef6   :  { %1333 = vrot.lane.b32.xlu0 %v2499_v48, %s2743_s11  ;;  %v2501_v51 = vpop.eup %2500 }
 0xef7   :  { %v1429_v52 = vadd.f32 1.0, %v2501_v51  ;;  %v2503_v53 = vpop.eup %2502 }
 0xef8   :  { %v1327_v54 = vadd.f32 1.0, %v2503_v53 }
 0xef9   :  { %2504 = vrcp.f32 %v1429_v52 }
 0xefa   :  { %2506 = vrcp.f32 %v1327_v54 }
 0xf03   :  { %v2505_v55 = vpop.eup %2504 }
 0xf04   :  { %v2507_v58 = vpop.eup %2506  ;;  %v1433_v10 = vmul.f32 %v2505_v55, %v3254_v2 }
 0xf05   :  { %v1331_v8 = vmul.f32 %v2507_v58, %v3263_v7 }
 0xf64   :  { %v1436_v56 = vpop.permute.xlu1 %1435 }
 0xf65   :  { %v1438_v57 = vmul.f32 %v2505_v55, %v1436_v56 }
 0xf67   :  { %1440 = vrot.lane.b32.xlu1 %v1438_v57, %s2744_s12 }
 0xf68   :  { %v1334_v59 = vpop.permute.xlu0 %1333 }
 0xf69   :  { %v1336_v61 = vmul.f32 %v2507_v58, %v1334_v59 }
 0xf6b   :  { %1461 = vperm.xlu1 %2415, %v1459_v60   ;;  %1338 = vrot.lane.b32.xlu0 %v1336_v61, %s2744_s12  ;;  %v1686_v61 = vsel %vm1684_vm3, 1, %v2742_v14 }
 0xf6f   :  { %1454 = vperm.xlu0 %2414, %v1452_v63  }
 0xfd9   :  { %v1441_v11 = vpop.permute.xlu1 %1440 }
 0xfda   :  { %v3257_v3 = vadd.f32 %v1441_v11, %v1433_v10 }
 0xfdc   :  { %2508 = vtanh.f32 %v3257_v3 }
 0xfdd   :  { %v1339_v32 = vpop.permute.xlu0 %1338 }
 0xfde   :  { %v3267_v35 = vadd.f32 %v1339_v32, %v1331_v8 }
 0xfe0   :  { %2510 = vtanh.f32 %v3267_v35 }
 0xfe6   :  { %v2509_v62 = vpop.eup %2508 }
 0xfe7   :  { %1446 = vrot.lane.b32.xlu1 %v2509_v62, %s2743_s11 }
 0xfea   :  { %v2511_v4 = vpop.eup %2510  ;;  %v3272_v22 = vpop.permute.xlu1 %1461 }
 0xfeb   :  { %1344 = vrot.lane.b32.xlu0 %v2511_v4, %s2743_s11  ;;  %vm1463_vm14 = vcmp.eq.s32.totalorder %v3272_v22, 1 }
 0xfec   :  { %v3322_v63 = vsel %vm1463_vm14, %v3257_v3, %v3254_v2 }
 0xfee   :  { %v3274_v29 = vpop.permute.xlu0 %1454 }
 0xfef   :  { %vm1456_vm15 = vcmp.eq.s32.totalorder %v3274_v29, 1 }
 0xff0   :  { %v3331_v23 = vsel %vm1456_vm15, %v3267_v35, %v3263_v7 }
0x1059   :  { %v1447_v6 = vpop.permute.xlu1 %1446 }
0x105a   :  { %v3276_v15 = vmul.f32 %v2505_v55, %v1447_v6 }
0x105c   :  { %v3283_v36 = vsel %vm1463_vm14, %v3276_v15, %v3213_v25  ;;  %v1473_v38 = vsel %vm1463_vm14, %v3276_v15, 0.0 }
0x105d   :  { %1585 = vrot.lane.b32.xlu1 %v3283_v36, %s2744_s12  ;;  %v1345_v37 = vpop.permute.xlu0 %1344 }
0x105e   :  { %v3287_v40 = vmul.f32 %v2507_v58, %v1345_v37 }
0x1060   :  { %v3294_v42 = vsel %vm1456_vm15, %v3287_v40, %v3224_v34  ;;  %v1466_v39 = vsel %vm1456_vm15, %v3287_v40, 0.0 }
0x1061   :  { %1483 = vrot.lane.b32.xlu0 %v3294_v42, %s2744_s12 }
0x10cf   :  { %v1586_v43 = vpop.permute.xlu1 %1585 }
0x10d0   :  { %2278 = vmatmul.mubr.msk.f32.vlgmr.msra.gmra.mrb[12].mxu1 %vm93_vm5, %v1586_v43 }
0x10d1   :  { %2394 = vmatpush3.bf16.msra.mxu1 %v2874_v5  ;;  %2299 = vmatprep.mubr.msk.f32.mxu1 %vm2740_vm0, %v2741_v1  ;;  %v1583_v5 = vld [vmem:[#allocation5 + $0x8] sm:$0xff] }
0x10d2   :  { %2395 = vmatprep.subr.bf16.mxu1 %v2739_v0 }
0x10d3   :  { %v1484_v25 = vpop.permute.xlu0 %1483 }
0x10d4   :  { %2267 = vmatmul.mubr.msk.f32.vlgmr.msra.gmra.mrb[12].mxu0 %vm93_vm5, %v1484_v25 }
0x10d5   :  { %2388 = vmatpush3.bf16.msra.mxu0 %v2876_v9  ;;  %2397 = vmatpush3.bf16.msra.mxu1 %v2879_v12 }
0x10d6   :  { %2389 = vmatprep.subr.bf16.mxu0 %v2739_v0  ;;  %2288 = vmatprep.mubr.msk.f32.mxu0 %vm2740_vm0, %v2741_v1  ;;  %vm1685_vm0 = vcmp.le.s32.totalorder %v2912_v24, 6 }
0x10d7   :  { %v1693_v59 = vsel %vm1685_vm0, 1, %v2742_v14 }
0x10d9   :  { %2391 = vmatpush3.bf16.msra.mxu0 %v2883_v13 }
0x11a3   :  { %v1655_v34 = vpop.f32.mrb[12].mxu1 }
0x11a4   :  { %v1659_v45 = vadd.f32 %v1655_v34, %v1583_v5  ;;  %v2279_v46 = vpop.f32.mrb[13].mxu1 }
0x11a5   :  { %v1816_v46 = vld [vmem:[#allocation5] sm:$0xff] }
0x11a6   :  { %2512 = vtanh.f32 %v1659_v45  ;;  %v2041_v0 = vmul.f32 -1.442695, %v1659_v45 }
0x11a7   :  { %v1553_v48 = vpop.f32.mrb[12].mxu0 }
0x11a8   :  { %v1557_v49 = vadd.f32 %v1553_v48, %v1481_v47  ;;  %v2268_v50 = vpop.f32.mrb[13].mxu0 }
0x11a9   :  { %v1715_v50 = vld [vmem:[#allocation2 + $0x38] sm:$0xff] }
0x11aa   :  { %2514 = vtanh.f32 %v1557_v49  ;;  %v2039_v1 = vmul.f32 -1.442695, %v1557_v49 }
0x11ab   :  { %2516 = vpow2.f32 %v2041_v0 }
0x11ac   :  { %2518 = vpow2.f32 %v2039_v1 }
0x11b0   :  { %v2513_v9 = vpop.eup %2512 }
0x11b1   :  { %1669 = vrot.lane.b32.xlu1 %v2513_v9, %s2743_s11 }
0x11b4   :  { %v2515_v12 = vpop.eup %2514 }
0x11b5   :  { %1567 = vrot.lane.b32.xlu0 %v2515_v12, %s2743_s11  ;;  %v2517_v13 = vpop.eup %2516 }
0x11b6   :  { %v1663_v51 = vadd.f32 1.0, %v2517_v13  ;;  %v2519_v52 = vpop.eup %2518 }
0x11b7   :  { %v1561_v53 = vadd.f32 1.0, %v2519_v52 }
0x11b8   :  { %2520 = vrcp.f32 %v1663_v51 }
0x11b9   :  { %2522 = vrcp.f32 %v1561_v53 }
0x11c2   :  { %v2521_v54 = vpop.eup %2520 }
0x11c3   :  { %v2523_v57 = vpop.eup %2522  ;;  %v1667_v10 = vmul.f32 %v2521_v54, %v3322_v63 }
0x11c4   :  { %v1565_v32 = vmul.f32 %v2523_v57, %v3331_v23 }
0x1223   :  { %v1670_v55 = vpop.permute.xlu1 %1669 }
0x1224   :  { %v1672_v56 = vmul.f32 %v2521_v54, %v1670_v55 }
0x1226   :  { %1674 = vrot.lane.b32.xlu1 %v1672_v56, %s2744_s12 }
0x1227   :  { %v1568_v58 = vpop.permute.xlu0 %1567 }
0x1228   :  { %v1570_v60 = vmul.f32 %v2523_v57, %v1568_v58 }
0x122a   :  { %1695 = vperm.xlu1 %2415, %v1693_v59   ;;  %1572 = vrot.lane.b32.xlu0 %v1570_v60, %s2744_s12 }
0x122e   :  { %1688 = vperm.xlu0 %2414, %v1686_v61   ;;  %v1925_v61 = vsel %vm1918_vm11, 1, %v2742_v14 }
0x1298   :  { %v1675_v11 = vpop.permute.xlu1 %1674 }
0x1299   :  { %v3325_v8 = vadd.f32 %v1675_v11, %v1667_v10  ;;  %v2544_v11 = vld [vmem:[%s3532_s4] sm:$0xff]  ;;  %s2745_s4 = smov [#allocation11]  }
0x129a   :  { %vm1917_vm0 = vcmp.gt.s32.totalorder %v2544_v11, 7  ;;  %s1971_s15 = sshll.u32 %s2745_s4, 4  ;;  %s1972_s15 = int_to_ptr.vmem [resolvable:$true] %s1971_s15 }
0x129b   :  { %2524 = vtanh.f32 %v3325_v8  ;;  %s2633_s22 = scalar_lea.vmem %s1972_s15, 1024  ;;  %p2638_p5 = scmp.lt.s32.totalorder %s1972_s15, %s1972_s15 }
0x129c   :  { %v1573_v62 = vpop.permute.xlu0 %1572  ;;  %p2634_p4 = scmp.ne.s32.totalorder %s1972_s15, %s2633_s22  ;;  %p2639_p6 = scmp.lt.s32.totalorder %s2633_s22, %s2633_s22 }
0x129d   :  { %v3335_v4 = vadd.f32 %v1573_v62, %v1565_v32  ;;  %v1919_v32 = vsel %vm1917_vm0, 1, %v2742_v14 }
0x129e   :  { %p2640_p7 = por %p2639_p6, %p2638_p5 }
0x129f   :  { %2526 = vtanh.f32 %v3335_v4 }
0x12a0   :  { %p2641_p8 = pnand %p2640_p7, %p2634_p4 }
0x12a5   :  { %v2525_v2 = vpop.eup %2524 }
0x12a6   :  { %1680 = vrot.lane.b32.xlu1 %v2525_v2, %s2743_s11 }
0x12a9   :  { %v2527_v3 = vpop.eup %2526  ;;  %v3340_v6 = vpop.permute.xlu1 %1695 }
0x12aa   :  { %1578 = vrot.lane.b32.xlu0 %v2527_v3, %s2743_s11  ;;  %vm1697_vm4 = vcmp.eq.s32.totalorder %v3340_v6, 1 }
0x12ab   :  { %v1699_v24 = vsel %vm1697_vm4, %v3325_v8, %v3322_v63  ;;  %v537_v63 = vsel %vm527_vm8, %v2996_v41, 0.0  ;;  %v1005_v8 = vsel %vm995_vm1, %v3136_v21, 0.0  ;;  %v1239_v41 = vsel %vm1229_vm6, %v3206_v16, 0.0 }
0x12ac   :  { %v530_v21 = vsel %vm520_vm9, %v3007_v44, 0.0 }
0x12ad   :  { %v3342_v37 = vpop.permute.xlu0 %1688 }
0x12ae   :  { %vm1690_vm10 = vcmp.eq.s32.totalorder %v3342_v37, 1 }
0x1318   :  { %v1681_v7 = vpop.permute.xlu1 %1680 }
0x1319   :  { %v3344_v35 = vmul.f32 %v2521_v54, %v1681_v7  ;;  %v1692_v7 = vsel %vm1690_vm10, %v3335_v4, %v3331_v23  ;;  %v771_v23 = vsel %vm761_vm12, %v3066_v30, 0.0 }
0x131b   :  { %v3351_v43 = vsel %vm1697_vm4, %v3344_v35, %v3283_v36  ;;  %v1707_v30 = vsel %vm1697_vm4, %v3344_v35, 0.0 }
0x131c   :  { %1818 = vrot.lane.b32.xlu1 %v3351_v43, %s2744_s12  ;;  %v1579_v25 = vpop.permute.xlu0 %1578 }
0x131d   :  { %v3355_v5 = vmul.f32 %v2523_v57, %v1579_v25 }
0x131f   :  { %v3362_v34 = vsel %vm1690_vm10, %v3355_v5, %v3294_v42  ;;  %v1700_v28 = vsel %vm1690_vm10, %v3355_v5, 0.0 }
0x1320   :  { %1717 = vrot.lane.b32.xlu0 %v3362_v34, %s2744_s12 }
0x138e   :  { %v1819_v45 = vpop.permute.xlu1 %1818 }
0x138f   :  { %2300 = vmatmul.mubr.msk.f32.vlgmr.msra.gmra.mrb[14].mxu1 %vm93_vm5, %v1819_v45 }
0x1392   :  { %v1718_v36 = vpop.permute.xlu0 %1717 }
0x1393   :  { %2289 = vmatmul.mubr.msk.f32.vlgmr.msra.gmra.mrb[14].mxu0 %vm93_vm5, %v1718_v36 }
0x1462   :  { %v1888_v47 = vpop.f32.mrb[14].mxu1 }
0x1463   :  { %v1892_v48 = vadd.f32 %v1888_v47, %v1816_v46  ;;  %v2301_v49 = vpop.f32.mrb[15].mxu1 }
0x1465   :  { %2528 = vtanh.f32 %v1892_v48  ;;  %v2045_v13 = vmul.f32 -1.442695, %v1892_v48 }
0x1466   :  { %v1787_v9 = vpop.f32.mrb[14].mxu0 }
0x1467   :  { %v1791_v12 = vadd.f32 %v1787_v9, %v1715_v50  ;;  %v2290_v0 = vpop.f32.mrb[15].mxu0 }
0x1469   :  { %2530 = vtanh.f32 %v1791_v12  ;;  %v2043_v51 = vmul.f32 -1.442695, %v1791_v12 }
0x146a   :  { %2532 = vpow2.f32 %v2045_v13 }
0x146b   :  { %2534 = vpow2.f32 %v2043_v51 }
0x146f   :  { %v2529_v42 = vpop.eup %2528 }
0x1470   :  { %1902 = vrot.lane.b32.xlu1 %v2529_v42, %s2743_s11 }
0x1473   :  { %v2531_v1 = vpop.eup %2530 }
0x1474   :  { %1801 = vrot.lane.b32.xlu0 %v2531_v1, %s2743_s11  ;;  %v2533_v52 = vpop.eup %2532 }
0x1475   :  { %v1896_v53 = vadd.f32 1.0, %v2533_v52  ;;  %v2535_v54 = vpop.eup %2534 }
0x1476   :  { %v1795_v55 = vadd.f32 1.0, %v2535_v54 }
0x1477   :  { %2536 = vrcp.f32 %v1896_v53 }
0x1478   :  { %2538 = vrcp.f32 %v1795_v55 }
0x1481   :  { %v2537_v56 = vpop.eup %2536 }
0x1482   :  { %v2539_v59 = vpop.eup %2538  ;;  %v1900_v62 = vmul.f32 %v2537_v56, %v1699_v24 }
0x1483   :  { %v1799_v25 = vmul.f32 %v2539_v59, %v1692_v7 }
0x14e2   :  { %v1903_v57 = vpop.permute.xlu1 %1902 }
0x14e3   :  { %v1905_v58 = vmul.f32 %v2537_v56, %v1903_v57 }
0x14e5   :  { %1907 = vrot.lane.b32.xlu1 %v1905_v58, %s2744_s12 }
0x14e6   :  { %v1802_v60 = vpop.permute.xlu0 %1801 }
0x14e7   :  { %v1804_v10 = vmul.f32 %v2539_v59, %v1802_v60 }
0x14e9   :  { %1927 = vperm.xlu1 %2415, %v1925_v61   ;;  %1806 = vrot.lane.b32.xlu0 %v1804_v10, %s2744_s12 }
0x14ed   :  { %1921 = vperm.xlu0 %2414, %v1919_v32  }
0x1557   :  { %v1908_v2 = vpop.permute.xlu1 %1907 }
0x1558   :  { %v1910_v3 = vadd.f32 %v1908_v2, %v1900_v62 }
0x155a   :  { %2540 = vtanh.f32 %v1910_v3 }
0x155b   :  { %v1807_v45 = vpop.permute.xlu0 %1806 }
0x155c   :  { %v1809_v36 = vadd.f32 %v1807_v45, %v1799_v25 }
0x155e   :  { %2542 = vtanh.f32 %v1809_v36 }
0x1564   :  { %v2541_v14 = vpop.eup %2540 }
0x1565   :  { %1913 = vrot.lane.b32.xlu1 %v2541_v14, %s2743_s11 }
0x1568   :  { %v2543_v46 = vpop.eup %2542  ;;  %v1928_v44 = vpop.permute.xlu1 %1927 }
0x1569   :  { %539 = vrot.lane.b32.xlu1 %v537_v63, %s2744_s12  ;;  %1812 = vrot.lane.b32.xlu0 %v2543_v46, %s2743_s11  ;;  %vm1929_vm8 = vcmp.eq.s32.totalorder %v1928_v44, 1 }
0x156c   :  { %v1922_v17 = vpop.permute.xlu0 %1921 }
0x156d   :  { %1007 = vrot.lane.b32.xlu1 %v1005_v8, %s2744_s12  ;;  %773 = vrot.lane.b32.xlu0 %v771_v23, %s2744_s12  ;;  %vm1923_vm9 = vcmp.eq.s32.totalorder %v1922_v17, 1 }
0x1571   :  { %1475 = vrot.lane.b32.xlu1 %v1473_v38, %s2744_s12  ;;  %1241 = vrot.lane.b32.xlu0 %v1239_v41, %s2744_s12 }
0x1575   :  { %766 = vrot.lane.b32.xlu1 %v764_v27, %s2744_s12  ;;  %1709 = vrot.lane.b32.xlu0 %v1707_v30, %s2744_s12 }
0x1579   :  { %1234 = vrot.lane.b32.xlu1 %v1232_v18, %s2744_s12  ;;  %532 = vrot.lane.b32.xlu0 %v530_v21, %s2744_s12 }
0x157d   :  { %1702 = vrot.lane.b32.xlu1 %v1700_v28, %s2744_s12  ;;  %1000 = vrot.lane.b32.xlu0 %v998_v33, %s2744_s12 }
0x1581   :  { %1468 = vrot.lane.b32.xlu0 %v1466_v39, %s2744_s12 }
0x15d7   :  { %v1914_v19 = vpop.permute.xlu1 %1913 }
0x15d8   :  { %v1916_v16 = vmul.f32 %v2537_v56, %v1914_v19 }
0x15da   :  { %v1938_v31 = vsel %vm1929_vm8, %v1916_v16, 0.0  ;;  %v1930_v6 = vsel %vm1929_vm8, %v1916_v16, %v3351_v43 }
0x15db   :  { %v540_v22 = vpop.permute.xlu1 %539  ;;  %1940 = vrot.lane.b32.xlu1 %v1938_v31, %s2744_s12  ;;  %v1813_v20 = vpop.permute.xlu0 %1812 }
0x15dc   :  { %543 = vst.msk [vmem:[#allocation11 + $0x30] sm:$0xff] %vm93_vm5, %v540_v22  ;;  %v1815_v26 = vmul.f32 %v2539_v59, %v1813_v20 }
0x15de   :  { %v1931_v15 = vsel %vm1923_vm9, %v1815_v26, 0.0  ;;  %v1924_v29 = vsel %vm1923_vm9, %v1815_v26, %v3362_v34 }
0x15df   :  { %v1008_v40 = vpop.permute.xlu1 %1007  ;;  %1933 = vrot.lane.b32.xlu0 %v1931_v15, %s2744_s12  ;;  %1945 = vrot.lane.b32.xlu1 %v1924_v29, %s2744_s12  ;;  %v774_v4 = vpop.permute.xlu0 %773 }
0x15e0   :  { %1011 = vst.msk [vmem:[#allocation11 + $0x20] sm:$0xff] %vm93_vm5, %v1008_v40  ;;  %777 = vst.msk [vmem:[#allocation11 + $0x28] sm:$0xff] %vm93_vm5, %v774_v4 }
0x15e3   :  { %v1476_v37 = vpop.permute.xlu1 %1475  ;;  %1950 = vrot.lane.b32.xlu0 %v1930_v6, %s2744_s12  ;;  %v1242_v35 = vpop.permute.xlu0 %1241 }
0x15e4   :  { %1479 = vst.msk [vmem:[#allocation11 + $0x10] sm:$0xff] %vm93_vm5, %v1476_v37  ;;  %1245 = vst.msk [vmem:[#allocation11 + $0x18] sm:$0xff] %vm93_vm5, %v1242_v35 }
0x15e7   :  { %v767_v5 = vpop.permute.xlu1 %766  ;;  %v1710_v34 = vpop.permute.xlu0 %1709 }
0x15e8   :  { %770 = vst.msk [vmem:[#allocation10 + $0x10] sm:$0xff] %vm93_vm5, %v767_v5  ;;  %1713 = vst.msk [vmem:[#allocation11 + $0x8] sm:$0xff] %vm93_vm5, %v1710_v34 }
0x15eb   :  { %v1235_v47 = vpop.permute.xlu1 %1234  ;;  %v533_v48 = vpop.permute.xlu0 %532 }
0x15ec   :  { %1238 = vst.msk [vmem:[#allocation10 + $0x20] sm:$0xff] %vm93_vm5, %v1235_v47  ;;  %536 = vst.msk [vmem:[#allocation10 + $0x8] sm:$0xff] %vm93_vm5, %v533_v48 }
0x15ef   :  { %v1703_v43 = vpop.permute.xlu1 %1702  ;;  %v1001_v49 = vpop.permute.xlu0 %1000 }
0x15f0   :  { %1706 = vst.msk [vmem:[#allocation10 + $0x30] sm:$0xff] %vm93_vm5, %v1703_v43  ;;  %1004 = vst.msk [vmem:[#allocation10 + $0x18] sm:$0xff] %vm93_vm5, %v1001_v49 }
0x15f3   :  { %v1469_v50 = vpop.permute.xlu0 %1468 }
0x15f4   :  { %1472 = vst.msk [vmem:[#allocation10 + $0x28] sm:$0xff] %vm93_vm5, %v1469_v50 }
0x164d   :  { %v1941_v9 = vpop.permute.xlu1 %1940 }
0x164e   :  { %1943 = vst.msk [vmem:[#allocation11] sm:$0xff] %vm93_vm5, %v1941_v9 }
0x164f   :  { %2644 = shalt.err (!%p2641_p8)
}
0x1650   :  { %s2645_s25 = scalar_lea.hbm %s3534_s6, 1024 }
0x1651   :  { %p2646_p9 = scmp.ne.s32.totalorder %s3534_s6, %s2645_s25  ;;  %p2649_p10 = scmp.lt.u32.totalorder %s2645_s25, %s3534_s6 }
0x1653   :  { %p2651_p11 = pnand %p2649_p10, %p2646_p9 }
0x1655   :  { %2654 = shalt.err (!%p2651_p11)
}
0x1656   :  { %1977 = dma.vmem_to_hbm [thread:$0]  %s1972_s15, 1024, %s3534_s6, [#allocation12], %s2735_s17, %s2735_s17, %s2736_s18   ;;  %v1946_v12 = vpop.permute.xlu1 %1945  ;;  %v1934_v0 = vpop.permute.xlu0 %1933 }
0x1657   :  { %1948 = vst.msk [vmem:[#allocation13] sm:$0xff] %vm93_vm5, %v1946_v12  ;;  %1937 = vst.msk [vmem:[#allocation10 + $0x38] sm:$0xff] %vm93_vm5, %v1934_v0  ;;  %s2655_s9 = scalar_lea.vmem %s1960_s19, 1024  ;;  %p2660_p13 = scmp.lt.s32.totalorder %s1960_s19, %s1960_s19 }
0x1658   :  { %p2656_p12 = scmp.ne.s32.totalorder %s1960_s19, %s2655_s9  ;;  %p2661_p0 = scmp.lt.s32.totalorder %s2655_s9, %s2655_s9 }
0x165a   :  { %p2662_p1 = por %p2661_p0, %p2660_p13 }
0x165c   :  { %p2663_p2 = pnand %p2662_p1, %p2656_p12 }
0x165e   :  { %2666 = shalt.err (!%p2663_p2)
}
0x165f   :  { %s2667_s10 = scalar_lea.hbm %s3533_s5, 1024 }
0x1660   :  { %p2668_p3 = scmp.ne.s32.totalorder %s3533_s5, %s2667_s10  ;;  %p2671_p4 = scmp.lt.u32.totalorder %s2667_s10, %s3533_s5 }
0x1662   :  { %p2673_p5 = pnand %p2671_p4, %p2668_p3 }
0x1664   :  { %2676 = shalt.err (!%p2673_p5)
}
0x1665   :  { %1965 = dma.vmem_to_hbm [thread:$0]  %s1960_s19, 1024, %s3533_s5, [#allocation4], %s2735_s17, %s2735_s17, %s2736_s18  }
0x1666   :  { %s2677_s16 = scalar_lea.vmem %s3472_s21, 128  ;;  %p2682_p7 = scmp.lt.s32.totalorder %s3472_s21, %s3472_s21 }
0x1667   :  { %p2678_p6 = scmp.ne.s32.totalorder %s3472_s21, %s2677_s16  ;;  %p2683_p8 = scmp.lt.s32.totalorder %s2677_s16, %s2677_s16 }
0x1669   :  { %p2684_p9 = por %p2683_p8, %p2682_p7 }
0x166b   :  { %p2685_p10 = pnand %p2684_p9, %p2678_p6 }
0x166d   :  { %2688 = shalt.err (!%p2685_p10)
}
0x166e   :  { %s2689_s22 = scalar_lea.hbm %s3535_s7, 128 }
0x166f   :  { %p2690_p11 = scmp.ne.s32.totalorder %s3535_s7, %s2689_s22  ;;  %p2693_p12 = scmp.lt.u32.totalorder %s2689_s22, %s3535_s7 }
0x1671   :  { %p2695_p13 = pnand %p2693_p12, %p2690_p11 }
0x1673   :  { %2698 = shalt.err (!%p2695_p13)
}
0x1674   :  { %1987 = dma.vmem_to_hbm [thread:$0]  %s3472_s21, 128, %s3535_s7, [#allocation12]   ;;  %v1951_v42 = vpop.permute.xlu0 %1950 }
0x1675   :  { %1953 = vst.msk [vmem:[#allocation14] sm:$0xff] %vm93_vm5, %v1951_v42  ;;  %s2699_s18 = scalar_lea.vmem %s3476_s30, 128  ;;  %p2704_p1 = scmp.lt.s32.totalorder %s3476_s30, %s3476_s30 }
0x1676   :  { %p2700_p0 = scmp.ne.s32.totalorder %s3476_s30, %s2699_s18  ;;  %p2705_p2 = scmp.lt.s32.totalorder %s2699_s18, %s2699_s18 }
0x1678   :  { %p2706_p3 = por %p2705_p2, %p2704_p1 }
0x167a   :  { %p2707_p4 = pnand %p2706_p3, %p2700_p0 }
0x167c   :  { %2710 = shalt.err (!%p2707_p4)
}
0x167d   :  { %s2711_s29 = scalar_lea.hbm %s3536_s8, 128 }
0x167e   :  { %p2712_p5 = scmp.ne.s32.totalorder %s3536_s8, %s2711_s29  ;;  %p2715_p6 = scmp.lt.u32.totalorder %s2711_s29, %s3536_s8 }
0x1680   :  { %p2717_p7 = pnand %p2715_p6, %p2712_p5 }
0x1682   :  { %2720 = shalt.err (!%p2717_p7)
}
0x1683   :  { %1997 = dma.vmem_to_hbm [thread:$0]  %s3476_s30, 128, %s3536_s8, [#allocation15]  }
0x1684   :  { %2727 = dma.done.wait [#allocation4], 1024  }
0x1685   :  { %2728 = vsyncadd [#allocation4], 4294966272 }
0x1686   :  { %2729 = dma.done.wait [#allocation12], 1152  }
0x1687   :  { %2730 = vsyncadd [#allocation12], 4294966144 }
0x1688   :  { %2731 = dma.done.wait [#allocation15], 128  }
0x1689   :  { %2732 = vsyncadd [#allocation15], 4294967168 }
0x168a   :  { %2010 = vsyncpa [#allocation3], 1 }
0x168b   :  { %2011 = vsyncpa [#allocation6], 1 }
0x168c   :  { %2012 = vsyncpa [#allocation9], 1 }
0x168d   :  { %2013 = vsyncpa [#allocation4], 1 }
0x168e   :  { %2014 = vsyncpa [#allocation12], 1 }
0x168f   :  { %2015 = vsyncpa [#allocation15], 1 }

</bundles_post_ra>
